<compile_context>
chip_gen: v7x
topology: tpu7x:2x2x1
jax: 0.10.0
libtpu: 0.0.40
codegen_flags: <defaults>
</compile_context>

<pallas_src>
import math

import numpy as np
import jax
import jax.numpy as jnp
from jax.experimental import pallas as pl
from jax.experimental.pallas import tpu as pltpu


# --------------------------------------------------------------------------
# VMEM-budgeted BN-tile selection.
# --------------------------------------------------------------------------
def _vmem_capacity_bytes():
    """Physical VMEM per core; conservative fallback if the query is unavailable."""
    try:
        info = pltpu.get_tpu_info()
        cap = getattr(info, "vmem_capacity_bytes", None)
        if cap:
            return int(cap)
    except Exception:
        pass
    return 64 * 1024 * 1024          # v7x per-TensorCore size: safe everywhere


def _pick_bn_tile(bn, bytes_per_row, budget):
    """Largest BN tile (multiple of 8 dividing bn, or bn itself) whose per-row VMEM
    footprint fits the budget; prefers >= 2 grid steps (v7x 2-TC sharding, pipelining)
    when that does not shrink the tile below max(64, best/2)."""
    cands = [t for t in range(8, bn + 1, 8) if bn % t == 0]
    if bn not in cands:
        cands.append(bn)             # full dim is always legal (sublane rule)
    cands.sort()
    fitting = [t for t in cands if t * bytes_per_row <= budget] or cands[:1]
    best = fitting[-1]
    multi = [t for t in fitting if bn // t >= 2]
    if multi and multi[-1] >= max(64, best // 2):
        return multi[-1]
    return best


# --------------------------------------------------------------------------
# Kernel 1: fused bidirectional GRU layer, time-major, direction-major output.
# --------------------------------------------------------------------------
def _bigru_kernel(x_ref, wif_ref, wib_ref, whhf_ref, whhb_ref,
                  bif_ref, bib_ref, bhnf_ref, bhnb_ref,
                  out_ref, gif_scr, gib_scr):
    # x_ref:    (Din, T, BNt, Cd)  time-major input tile (Din=1 first layer, 2 after)
    # wif/wib:  (Din, Cd, 3H)      input-gate weights per direction (columns r, z, n)
    # whhf/b:   (H, 3H)            fused hidden-gate weights per direction
    # bif/bib:  (1, 3H)            b_ih + b_hh folded for r, z; b_in for n
    # bhnf/b:   (1, H)             hidden n-gate bias (stays inside r*(.))
    # out_ref:  (2, T, BNt, H)     direction-major output (0 = forward, 1 = backward)
    # gif/gib:  (T, BNt, 3H) f32   scratch for the hoisted input projections
    Din, T, BNt, Cd = x_ref.shape
    H = whhf_ref.shape[0]
    G = 3 * H

    # ---- input projection for all timesteps, per direction: straight into scratch ----
    def in_proj(w_ref, b_ref, scr):
        acc = jnp.dot(x_ref[0].reshape(T * BNt, Cd), w_ref[0],
                      preferred_element_type=jnp.float32)
        for d in range(1, Din):                       # Din is static (1 or 2)
            acc = acc + jnp.dot(x_ref[d].reshape(T * BNt, Cd), w_ref[d],
                                preferred_element_type=jnp.float32)
        scr[...] = (acc + b_ref[...]).reshape(T, BNt, G)   # leading-dim split: free

    in_proj(wif_ref, bif_ref, gif_scr)
    in_proj(wib_ref, bib_ref, gib_scr)

    # ---- weights / biases resident for the whole serial loop ----
    whh_f = whhf_ref[...]
    whh_b = whhb_ref[...]
    bhn_f = bhnf_ref[...]
    bhn_b = bhnb_ref[...]

    def gate(gi, h, whh, bhn):
        # one fused (BNt, H) x (H, 3H) matmul on the critical path; gate math in f32
        gh = jnp.dot(h.astype(whh.dtype), whh, preferred_element_type=jnp.float32)
        r = jax.nn.sigmoid(gi[:, :H] + gh[:, :H])
        z = jax.nn.sigmoid(gi[:, H:2 * H] + gh[:, H:2 * H])
        n = jnp.tanh(gi[:, 2 * H:] + r * (gh[:, 2 * H:] + bhn))
        return (1.0 - z) * n + z * h

    def step(t, carry):
        h_f, h_b = carry                  # hidden states live in the carry (vregs)
        tb = T - 1 - t
        h_f = gate(gif_scr[t], h_f, whh_f, bhn_f)
        h_b = gate(gib_scr[tb], h_b, whh_b, bhn_b)
        out_ref[0, t] = h_f.astype(out_ref.dtype)    # full-last-dim (lane-dense) stores
        out_ref[1, tb] = h_b.astype(out_ref.dtype)
        return (h_f, h_b)

    h0 = jnp.zeros((BNt, H), jnp.float32)
    jax.lax.fori_loop(0, T, step, (h0, h0), unroll=True if T <= 32 else 4)


def bigru_layer(x_split, p, compute_dtype=jnp.bfloat16):
    """One bidirectional GRU layer.
    x_split: (Din, T, BN, Cd) — Din=1 (raw input) or 2 (previous layer's fwd/bwd halves).
    Returns (2, T, BN, H) in compute_dtype (index 0 = forward, 1 = backward).
    Weights in PyTorch layout: w_ih (3H, Din*Cd), w_hh (3H, H), b_ih (3H,), b_hh (3H,)."""
    Din, T, BN, Cd = x_split.shape
    H = p["w_hh_f"].shape[1]
    G = 3 * H
    assert p["w_ih_f"].shape == (G, Din * Cd)

    # Keep recurrent weights f32 for small H: the bf16 MXU saving does not cover the
    # per-step h cast on v5e, and it avoids bf16 rounding compounding over T.
    rec_dtype = compute_dtype if H >= 128 else jnp.float32

    def prep(w_ih, w_hh, b_ih, b_hh):
        wi = w_ih.T.reshape(Din, Cd, G).astype(compute_dtype)   # per-direction-of-input chunks
        whh = w_hh.T.astype(rec_dtype)
        # fold b_hh into the input bias for r and z; keep b_hn separate (inside r*(.))
        bi = b_ih + jnp.concatenate([b_hh[:2 * H], jnp.zeros((H,), b_hh.dtype)])
        bhn = b_hh[2 * H:]
        return (wi, whh, bi.reshape(1, G).astype(jnp.float32),
                bhn.reshape(1, H).astype(jnp.float32))

    wif, whhf, bif, bhnf = prep(p["w_ih_f"], p["w_hh_f"], p["b_ih_f"], p["b_hh_f"])
    wib, whhb, bib, bhnb = prep(p["w_ih_b"], p["w_hh_b"], p["b_ih_b"], p["b_hh_b"])

    x_split = x_split.astype(compute_dtype)    # host-side cast: halves the x DMA in bf16

    # ---- VMEM-budgeted BN tile ----
    x_item = jnp.dtype(compute_dtype).itemsize
    bytes_per_row = (2 * T * G * 4                     # gif/gib f32 scratch
                     + 2 * Din * T * Cd * x_item       # x block (double-buffered)
                     + 2 * 2 * T * H * x_item          # out block (double-buffered)
                     + T * G * 4)                      # prologue matmul temporary
    weight_bytes = 2 * (2 * Din * Cd * G * x_item + 2 * H * G * 4 + (2 * G + 2 * H) * 4)
    vmem_limit = int(_vmem_capacity_bytes() * 0.78)    # ~100 MiB on v5e/v6e, ~50 on v7x
    budget = max(int(vmem_limit * 0.9) - weight_bytes, 0)
    tile = _pick_bn_tile(BN, bytes_per_row, budget)

    return pl.pallas_call(
        _bigru_kernel,
        out_shape=jax.ShapeDtypeStruct((2, T, BN, H), compute_dtype),
        grid=(BN // tile,),
        in_specs=[
            pl.BlockSpec((Din, T, tile, Cd), lambda i: (0, 0, i, 0)),
            pl.BlockSpec((Din, Cd, G), lambda i: (0, 0, 0)),
            pl.BlockSpec((Din, Cd, G), lambda i: (0, 0, 0)),
            pl.BlockSpec((H, G), lambda i: (0, 0)),
            pl.BlockSpec((H, G), lambda i: (0, 0)),
            pl.BlockSpec((1, G), lambda i: (0, 0)),
            pl.BlockSpec((1, G), lambda i: (0, 0)),
            pl.BlockSpec((1, H), lambda i: (0, 0)),
            pl.BlockSpec((1, H), lambda i: (0, 0)),
        ],
        out_specs=pl.BlockSpec((2, T, tile, H), lambda i: (0, 0, i, 0)),
        scratch_shapes=[pltpu.VMEM((T, tile, G), jnp.float32),
                        pltpu.VMEM((T, tile, G), jnp.float32)],
        compiler_params=pltpu.CompilerParams(
            dimension_semantics=("parallel",),
            vmem_limit_bytes=vmem_limit,
        ),
    )(x_split, wif, wib, whhf, whhb, bif, bib, bhnf, bhnb)


# --------------------------------------------------------------------------
# Kernel 2: linear -> tanh -> softmax over T -> weighted sum over T -> LayerNorm.
# Time-major, direction-split input (no mid-lane slicing of y).
# --------------------------------------------------------------------------
def _attpool_ln_kernel(y_ref, wff_ref, wfb_ref, wbf_ref, wbb_ref,
                       bf_ref, bb_ref, g_ref, bt_ref, out_ref):
    # y_ref: (2, T, BNt, H) time-major, direction-major GRU output
    # w**:   (H, H) quadrants of the (C, C) linear weight (input-dir, output-dir)
    # bf/bb: (1, H) linear-bias halves; g/bt: (1, 2H) LayerNorm; out_ref: (BNt, 2H)
    _, T, BNt, H = y_ref.shape
    yf = y_ref[0]
    yb = y_ref[1]
    yf2 = yf.reshape(T * BNt, H)
    yb2 = yb.reshape(T * BNt, H)

    def logits(w_from_f, w_from_b, b):
        a = (jnp.dot(yf2, w_from_f[...], preferred_element_type=jnp.float32)
             + jnp.dot(yb2, w_from_b[...], preferred_element_type=jnp.float32)
             + b[...])
        return jnp.tanh(a).reshape(T, BNt, H)

    # Softmax over the leading (time) axis.  tanh logits are in (-1, 1) so exp cannot
    # overflow and the max-shift is dropped (softmax is shift-invariant); the divide is
    # an EUP approx reciprocal hoisted out of the time sum.
    ef = jnp.exp(logits(wff_ref, wbf_ref, bf_ref))
    eb = jnp.exp(logits(wfb_ref, wbb_ref, bb_ref))
    inv_f = pl.reciprocal(jnp.sum(ef, axis=0), approx=True)       # (BNt, H)
    inv_b = pl.reciprocal(jnp.sum(eb, axis=0), approx=True)
    xf = jnp.sum(yf.astype(jnp.float32) * ef, axis=0) * inv_f
    xb = jnp.sum(yb.astype(jnp.float32) * eb, axis=0) * inv_b

    x = jnp.concatenate([xf, xb], axis=-1)          # (BNt, 2H) — once per grid step
    mu = jnp.mean(x, axis=-1, keepdims=True)
    var = jnp.mean((x - mu) ** 2, axis=-1, keepdims=True)
    xn = (x - mu) * jax.lax.rsqrt(var + 1e-5)
    out_ref[...] = (xn * g_ref[...] + bt_ref[...]).astype(out_ref.dtype)


def attpool_layernorm(y, lin_w, lin_b, ln_g, ln_b, compute_dtype=jnp.bfloat16):
    """y: (2, T, B*N, H) direction-major, time-major GRU output.
    Returns (B*N, 2H) f32: softmax-over-T attention pooling + LayerNorm."""
    _, T, BN, H = y.shape
    C = 2 * H
    W = lin_w.T                                    # (in C, out C)
    wff = W[:H, :H].astype(compute_dtype)
    wfb = W[:H, H:].astype(compute_dtype)
    wbf = W[H:, :H].astype(compute_dtype)
    wbb = W[H:, H:].astype(compute_dtype)
    bf = lin_b[:H].reshape(1, H).astype(jnp.float32)
    bb = lin_b[H:].reshape(1, H).astype(jnp.float32)
    y = y.astype(compute_dtype)

    item = jnp.dtype(compute_dtype).itemsize
    bytes_per_row = (2 * 2 * T * H * item          # y block (double-buffered)
                     + 4 * T * H * 4               # ef/eb + logits temporaries (f32)
                     + 4 * C * 4)                  # out block + pooled temps
    vmem_limit = int(_vmem_capacity_bytes() * 0.78)
    budget = max(int(vmem_limit * 0.85), 0)
    tile = _pick_bn_tile(BN, bytes_per_row, budget)

    return pl.pallas_call(
        _attpool_ln_kernel,
        out_shape=jax.ShapeDtypeStruct((BN, C), jnp.float32),
        grid=(BN // tile,),
        in_specs=[
            pl.BlockSpec((2, T, tile, H), lambda i: (0, 0, i, 0)),
            pl.BlockSpec((H, H), lambda i: (0, 0)),
            pl.BlockSpec((H, H), lambda i: (0, 0)),
            pl.BlockSpec((H, H), lambda i: (0, 0)),
            pl.BlockSpec((H, H), lambda i: (0, 0)),
            pl.BlockSpec((1, H), lambda i: (0, 0)),
            pl.BlockSpec((1, H), lambda i: (0, 0)),
            pl.BlockSpec((1, C), lambda i: (0, 0)),
            pl.BlockSpec((1, C), lambda i: (0, 0)),
        ],
        out_specs=pl.BlockSpec((tile, C), lambda i: (i, 0)),
        compiler_params=pltpu.CompilerParams(
            dimension_semantics=("parallel",),
            vmem_limit_bytes=vmem_limit,
        ),
    )(y, wff, wfb, wbf, wbb, bf, bb,
      ln_g.reshape(1, C).astype(jnp.float32), ln_b.reshape(1, C).astype(jnp.float32))


# --------------------------------------------------------------------------
# Full forward (mirrors the PyTorch module's forward semantics).
# --------------------------------------------------------------------------
def gru_model_forward(x, params, num_layers, compute_dtype=jnp.bfloat16):
    B, T, N, C_in = x.shape
    # PyTorch does a *raw* reshape (B,T,N,C)->(B*N,T,C) (it mixes T and N); reproduce it
    # exactly, then go time-major once for the whole GRU stack.
    h_bn = x.reshape(B * N, T, C_in)
    h = jnp.transpose(h_bn, (1, 0, 2))[None]       # (1, T, BN, Cin) — layer-0 split axis
    # dropout: identity at inference

    for layer in range(num_layers):
        # each layer returns (2, T, BN, H); the next layer consumes the split halves
        h = bigru_layer(h, params["rnn"][layer], compute_dtype)

    H = h.shape[-1]
    # Undo the GRU's raw (B*N, T) batching and regroup per-(b,n) sequences, keeping the
    # attention pool time-major (reductions run over the leading axis in-kernel).
    y = jnp.transpose(h, (0, 2, 1, 3)).reshape(2, B, T, N, H)
    y = jnp.transpose(y, (0, 2, 1, 3, 4)).reshape(2, T, B * N, H)
    out = attpool_layernorm(y, params["lin_w"], params["lin_b"],
                            params["ln_g"], params["ln_b"], compute_dtype)
    return out.reshape(B, N, 2 * H)


# --------------------------------------------------------------------------
# Pure-JAX reference (for correctness check).
# --------------------------------------------------------------------------
def _gru_scan_ref(x_tm, w_ih, w_hh, b_ih, b_hh):
    T, BN, _ = x_tm.shape
    H = w_hh.shape[1]

    def step(h, x_t):
        gi = x_t @ w_ih.T + b_ih
        gh = h @ w_hh.T + b_hh
        ir, iz, inn = jnp.split(gi, 3, axis=-1)
        hr, hz, hn = jnp.split(gh, 3, axis=-1)
        r = jax.nn.sigmoid(ir + hr)
        z = jax.nn.sigmoid(iz + hz)
        n = jnp.tanh(inn + r * hn)
        h_new = (1.0 - z) * n + z * h
        return h_new, h_new

    _, out = jax.lax.scan(step, jnp.zeros((BN, H), jnp.float32), x_tm)
    return out


def reference_forward(x, params, num_layers):
    B, T, N, C_in = x.shape
    h = x.reshape(B * N, T, C_in)
    for layer in range(num_layers):
        p = params["rnn"][layer]
        x_tm = jnp.transpose(h, (1, 0, 2))
        out_f = _gru_scan_ref(x_tm, p["w_ih_f"], p["w_hh_f"], p["b_ih_f"], p["b_hh_f"])
        out_b = _gru_scan_ref(x_tm[::-1], p["w_ih_b"], p["w_hh_b"],
                              p["b_ih_b"], p["b_hh_b"])[::-1]
        h = jnp.transpose(jnp.concatenate([out_f, out_b], axis=-1), (1, 0, 2))
    C = h.shape[-1]
    y = h.reshape(B, T, N, C)
    att = jnp.tanh(jnp.einsum("btnc,dc->btnd", y, params["lin_w"]) + params["lin_b"])
    att = jax.nn.softmax(att, axis=1)
    z = jnp.sum(y * att, axis=1)                   # (B, N, C)
    mu = jnp.mean(z, axis=-1, keepdims=True)
    var = jnp.mean((z - mu) ** 2, axis=-1, keepdims=True)
    zn = (z - mu) / jnp.sqrt(var + 1e-5)
    return zn * params["ln_g"] + params["ln_b"]


# --------------------------------------------------------------------------
# Deterministic parameter init (PyTorch-style shapes & uniform bounds).
# --------------------------------------------------------------------------
def init_params(key, in_channels, out_channels, num_layers):
    H = out_channels // 2
    k = 1.0 / math.sqrt(H)
    keys = jax.random.split(key, num_layers * 8 + 2)
    idx = 0
    params = {"rnn": []}
    for layer in range(num_layers):
        in_l = in_channels if layer == 0 else out_channels
        lp = {}
        for d in ("f", "b"):
            lp[f"w_ih_{d}"] = jax.random.uniform(keys[idx], (3 * H, in_l),
                                                 minval=-k, maxval=k); idx += 1
            lp[f"w_hh_{d}"] = jax.random.uniform(keys[idx], (3 * H, H),
                                                 minval=-k, maxval=k); idx += 1
            lp[f"b_ih_{d}"] = jax.random.uniform(keys[idx], (3 * H,),
                                                 minval=-k, maxval=k); idx += 1
            lp[f"b_hh_{d}"] = jax.random.uniform(keys[idx], (3 * H,),
                                                 minval=-k, maxval=k); idx += 1
        params["rnn"].append(lp)
    kl = 1.0 / math.sqrt(out_channels)
    params["lin_w"] = jax.random.uniform(keys[idx], (out_channels, out_channels),
                                         minval=-kl, maxval=kl); idx += 1
    params["lin_b"] = jax.random.uniform(keys[idx], (out_channels,),
                                         minval=-kl, maxval=kl)
    params["ln_g"] = jnp.ones((out_channels,), jnp.float32)
    params["ln_b"] = jnp.zeros((out_channels,), jnp.float32)
    return params


if __name__ == "__main__":
    B, T, N, C_in, C_out = 2, 8, 4, 16, 32

    key = jax.random.PRNGKey(0)
    kx, kp1, kp2 = jax.random.split(key, 3)
    x = jax.random.normal(kx, (B, T, N, C_in), dtype=jnp.float32)

    # --- num_layers = 1 (args.num_layers == 1 -> GRU dropout = 0) ---
    params1 = init_params(kp1, C_in, C_out, num_layers=1)
    ref1 = jax.block_until_ready(reference_forward(x, params1, 1))

    # bf16 default path: bf16 matmul inputs / f32 accumulation & gate math.
    out_bf16 = jax.block_until_ready(gru_model_forward(x, params1, 1, jnp.bfloat16))
    assert out_bf16.shape == (B, N, C_out), out_bf16.shape
    np.testing.assert_allclose(np.asarray(out_bf16), np.asarray(ref1),
                               atol=5e-2, rtol=5e-2)

    # f32 path — tight tolerance (approx reciprocal in the softmax normalization).
    out_f32 = jax.block_until_ready(gru_model_forward(x, params1, 1, jnp.float32))
    np.testing.assert_allclose(np.asarray(out_f32), np.asarray(ref1),
                               atol=1e-2, rtol=1e-2)

    # --- num_layers = 2: exercises the split-direction layer chaining (Din = 2) ---
    params2 = init_params(kp2, C_in, C_out, num_layers=2)
    ref2 = jax.block_until_ready(reference_forward(x, params2, 2))
    out2 = jax.block_until_ready(gru_model_forward(x, params2, 2, jnp.bfloat16))
    np.testing.assert_allclose(np.asarray(out2), np.asarray(ref2),
                               atol=5e-2, rtol=5e-2)

    print("KERNEL_OK")
</pallas_src>

<mosaic_0001>
module attributes {stable_mosaic.version = 11 : i64} {
  func.func @_bigru_kernel(%arg0: i32, %arg1: memref<1x8x8x16xbf16, #tpu.memory_space<vmem>>, %arg2: memref<1x16x48xbf16, #tpu.memory_space<vmem>>, %arg3: memref<1x16x48xbf16, #tpu.memory_space<vmem>>, %arg4: memref<16x48xf32, #tpu.memory_space<vmem>>, %arg5: memref<16x48xf32, #tpu.memory_space<vmem>>, %arg6: memref<1x48xf32, #tpu.memory_space<vmem>>, %arg7: memref<1x48xf32, #tpu.memory_space<vmem>>, %arg8: memref<1x16xf32, #tpu.memory_space<vmem>>, %arg9: memref<1x16xf32, #tpu.memory_space<vmem>>, %arg10: memref<2x8x8x16xbf16, #tpu.memory_space<vmem>>, %arg11: memref<8x8x48xf32, #tpu.memory_space<vmem>>, %arg12: memref<8x8x48xf32, #tpu.memory_space<vmem>>) attributes {dimension_semantics = [#tpu.dimension_semantics<parallel>], iteration_bounds = array<i64: 1>, scalar_prefetch = 0 : i64, scratch_operands = 2 : i64, tpu.core_type = #tpu.core_type<tc>, window_params = [{transform_indices = @transform_0, window_bounds = array<i64: 1, 8, 8, 16>}, {pipeline_mode = #tpu.pipeline_mode<synchronous>, transform_indices = @transform_1, window_bounds = array<i64: 1, 16, 48>}, {pipeline_mode = #tpu.pipeline_mode<synchronous>, transform_indices = @transform_2, window_bounds = array<i64: 1, 16, 48>}, {pipeline_mode = #tpu.pipeline_mode<synchronous>, transform_indices = @transform_3, window_bounds = array<i64: 16, 48>}, {pipeline_mode = #tpu.pipeline_mode<synchronous>, transform_indices = @transform_4, window_bounds = array<i64: 16, 48>}, {pipeline_mode = #tpu.pipeline_mode<synchronous>, transform_indices = @transform_5, window_bounds = array<i64: 1, 48>}, {pipeline_mode = #tpu.pipeline_mode<synchronous>, transform_indices = @transform_6, window_bounds = array<i64: 1, 48>}, {pipeline_mode = #tpu.pipeline_mode<synchronous>, transform_indices = @transform_7, window_bounds = array<i64: 1, 16>}, {pipeline_mode = #tpu.pipeline_mode<synchronous>, transform_indices = @transform_8, window_bounds = array<i64: 1, 16>}, {transform_indices = @transform_9, window_bounds = array<i64: 2, 8, 8, 16>}]} {
    %c0 = arith.constant 0 : index
    %c0_0 = arith.constant 0 : index
    %c0_1 = arith.constant 0 : index
    %c0_2 = arith.constant 0 : index
    %0 = vector.load %arg1[%c0, %c0_0, %c0_1, %c0_2] : memref<1x8x8x16xbf16, #tpu.memory_space<vmem>>, vector<1x8x8x16xbf16>
    %1 = vector.shape_cast %0 : vector<1x8x8x16xbf16> to vector<8x8x16xbf16>
    %2 = vector.shape_cast %1 : vector<8x8x16xbf16> to vector<64x16xbf16>
    %c0_3 = arith.constant 0 : index
    %c0_4 = arith.constant 0 : index
    %c0_5 = arith.constant 0 : index
    %3 = vector.load %arg2[%c0_3, %c0_4, %c0_5] : memref<1x16x48xbf16, #tpu.memory_space<vmem>>, vector<1x16x48xbf16>
    %4 = vector.shape_cast %3 : vector<1x16x48xbf16> to vector<16x48xbf16>
    %cst = arith.constant dense<0.000000e+00> : vector<64x48xf32>
    %5 = tpu.matmul %2, %4, %cst {dimension_numbers = #tpu.dot_dimension_numbers<[1], [0], [0], [1], [0, 0, 1, 1], [], []>} : vector<64x16xbf16>, vector<16x48xbf16>, vector<64x48xf32> -> vector<64x48xf32>
    %c0_6 = arith.constant 0 : index
    %c0_7 = arith.constant 0 : index
    %6 = vector.load %arg6[%c0_6, %c0_7] : memref<1x48xf32, #tpu.memory_space<vmem>>, vector<1x48xf32>
    %7 = vector.broadcast %6 : vector<1x48xf32> to vector<64x48xf32>
    %8 = arith.addf %5, %7 : vector<64x48xf32>
    %9 = vector.shape_cast %8 : vector<64x48xf32> to vector<8x8x48xf32>
    %c0_8 = arith.constant 0 : index
    %c0_9 = arith.constant 0 : index
    %c0_10 = arith.constant 0 : index
    %10 = vector.load %arg11[%c0_8, %c0_9, %c0_10] : memref<8x8x48xf32, #tpu.memory_space<vmem>>, vector<8x8x48xf32>
    tpu.vector_store %arg11[%c0_8, %c0_9, %c0_10], %9 {strides = array<i32>} : memref<8x8x48xf32, #tpu.memory_space<vmem>>, vector<8x8x48xf32>,
    %c0_11 = arith.constant 0 : index
    %c0_12 = arith.constant 0 : index
    %c0_13 = arith.constant 0 : index
    %c0_14 = arith.constant 0 : index
    %11 = vector.load %arg1[%c0_11, %c0_12, %c0_13, %c0_14] : memref<1x8x8x16xbf16, #tpu.memory_space<vmem>>, vector<1x8x8x16xbf16>
    %12 = vector.shape_cast %11 : vector<1x8x8x16xbf16> to vector<8x8x16xbf16>
    %13 = vector.shape_cast %12 : vector<8x8x16xbf16> to vector<64x16xbf16>
    %c0_15 = arith.constant 0 : index
    %c0_16 = arith.constant 0 : index
    %c0_17 = arith.constant 0 : index
    %14 = vector.load %arg3[%c0_15, %c0_16, %c0_17] : memref<1x16x48xbf16, #tpu.memory_space<vmem>>, vector<1x16x48xbf16>
    %15 = vector.shape_cast %14 : vector<1x16x48xbf16> to vector<16x48xbf16>
    %cst_18 = arith.constant dense<0.000000e+00> : vector<64x48xf32>
    %16 = tpu.matmul %13, %15, %cst_18 {dimension_numbers = #tpu.dot_dimension_numbers<[1], [0], [0], [1], [0, 0, 1, 1], [], []>} : vector<64x16xbf16>, vector<16x48xbf16>, vector<64x48xf32> -> vector<64x48xf32>
    %c0_19 = arith.constant 0 : index
    %c0_20 = arith.constant 0 : index
    %17 = vector.load %arg7[%c0_19, %c0_20] : memref<1x48xf32, #tpu.memory_space<vmem>>, vector<1x48xf32>
    %18 = vector.broadcast %17 : vector<1x48xf32> to vector<64x48xf32>
    %19 = arith.addf %16, %18 : vector<64x48xf32>
    %20 = vector.shape_cast %19 : vector<64x48xf32> to vector<8x8x48xf32>
    %c0_21 = arith.constant 0 : index
    %c0_22 = arith.constant 0 : index
    %c0_23 = arith.constant 0 : index
    %21 = vector.load %arg12[%c0_21, %c0_22, %c0_23] : memref<8x8x48xf32, #tpu.memory_space<vmem>>, vector<8x8x48xf32>
    tpu.vector_store %arg12[%c0_21, %c0_22, %c0_23], %20 {strides = array<i32>} : memref<8x8x48xf32, #tpu.memory_space<vmem>>, vector<8x8x48xf32>,
    %c0_24 = arith.constant 0 : index
    %c0_25 = arith.constant 0 : index
    %22 = vector.load %arg4[%c0_24, %c0_25] : memref<16x48xf32, #tpu.memory_space<vmem>>, vector<16x48xf32>
    %c0_26 = arith.constant 0 : index
    %c0_27 = arith.constant 0 : index
    %23 = vector.load %arg5[%c0_26, %c0_27] : memref<16x48xf32, #tpu.memory_space<vmem>>, vector<16x48xf32>
    %c0_28 = arith.constant 0 : index
    %c0_29 = arith.constant 0 : index
    %24 = vector.load %arg8[%c0_28, %c0_29] : memref<1x16xf32, #tpu.memory_space<vmem>>, vector<1x16xf32>
    %c0_30 = arith.constant 0 : index
    %c0_31 = arith.constant 0 : index
    %25 = vector.load %arg9[%c0_30, %c0_31] : memref<1x16xf32, #tpu.memory_space<vmem>>, vector<1x16xf32>
    %cst_32 = arith.constant 0.000000e+00 : f32
    %26 = vector.broadcast %cst_32 : f32 to vector<8x16xf32>
    %c0_i32 = arith.constant 0 : i32
    %c7_i32 = arith.constant 7 : i32
    %27 = arith.subi %c7_i32, %c0_i32 : i32
    %28 = arith.index_cast %c0_i32 : i32 to index
    %c0_33 = arith.constant 0 : index
    %c0_34 = arith.constant 0 : index
    %29 = vector.load %arg11[%28, %c0_33, %c0_34] : memref<8x8x48xf32, #tpu.memory_space<vmem>>, vector<1x8x48xf32>
    %30 = vector.shape_cast %29 : vector<1x8x48xf32> to vector<8x48xf32>
    %cst_35 = arith.constant dense<0.000000e+00> : vector<8x48xf32>
    %31 = tpu.matmul %26, %22, %cst_35 {dimension_numbers = #tpu.dot_dimension_numbers<[1], [0], [0], [1], [0, 0, 1, 1], [], []>} : vector<8x16xf32>, vector<16x48xf32>, vector<8x48xf32> -> vector<8x48xf32>
    %32 = vector.extract_strided_slice %30 {offsets = [0, 0], sizes = [8, 16], strides = [1, 1]} : vector<8x48xf32> to vector<8x16xf32>
    %33 = vector.extract_strided_slice %31 {offsets = [0, 0], sizes = [8, 16], strides = [1, 1]} : vector<8x48xf32> to vector<8x16xf32>
    %34 = arith.addf %32, %33 : vector<8x16xf32>
    %35 = arith.negf %34 : vector<8x16xf32>
    %36 = math.exp %35 : vector<8x16xf32>
    %cst_36 = arith.constant 1.000000e+00 : f32
    %37 = vector.broadcast %cst_36 : f32 to vector<8x16xf32>
    %38 = arith.addf %37, %36 : vector<8x16xf32>
    %39 = arith.divf %37, %38 : vector<8x16xf32>
    %40 = vector.extract_strided_slice %30 {offsets = [0, 16], sizes = [8, 16], strides = [1, 1]} : vector<8x48xf32> to vector<8x16xf32>
    %41 = vector.extract_strided_slice %31 {offsets = [0, 16], sizes = [8, 16], strides = [1, 1]} : vector<8x48xf32> to vector<8x16xf32>
    %42 = arith.addf %40, %41 : vector<8x16xf32>
    %43 = arith.negf %42 : vector<8x16xf32>
    %44 = math.exp %43 : vector<8x16xf32>
    %cst_37 = arith.constant 1.000000e+00 : f32
    %45 = vector.broadcast %cst_37 : f32 to vector<8x16xf32>
    %46 = arith.addf %45, %44 : vector<8x16xf32>
    %47 = arith.divf %45, %46 : vector<8x16xf32>
    %48 = vector.extract_strided_slice %30 {offsets = [0, 32], sizes = [8, 16], strides = [1, 1]} : vector<8x48xf32> to vector<8x16xf32>
    %49 = vector.extract_strided_slice %31 {offsets = [0, 32], sizes = [8, 16], strides = [1, 1]} : vector<8x48xf32> to vector<8x16xf32>
    %50 = vector.broadcast %24 : vector<1x16xf32> to vector<8x16xf32>
    %51 = arith.addf %49, %50 : vector<8x16xf32>
    %52 = arith.mulf %39, %51 : vector<8x16xf32>
    %53 = arith.addf %48, %52 : vector<8x16xf32>
    %54 = math.tanh %53 : vector<8x16xf32>
    %cst_38 = arith.constant 1.000000e+00 : f32
    %55 = vector.broadcast %cst_38 : f32 to vector<8x16xf32>
    %56 = arith.subf %55, %47 : vector<8x16xf32>
    %57 = arith.mulf %56, %54 : vector<8x16xf32>
    %58 = arith.mulf %47, %26 : vector<8x16xf32>
    %59 = arith.addf %57, %58 : vector<8x16xf32>
    %60 = arith.index_cast %27 : i32 to index
    %c0_39 = arith.constant 0 : index
    %c0_40 = arith.constant 0 : index
    %61 = vector.load %arg12[%60, %c0_39, %c0_40] : memref<8x8x48xf32, #tpu.memory_space<vmem>>, vector<1x8x48xf32>
    %62 = vector.shape_cast %61 : vector<1x8x48xf32> to vector<8x48xf32>
    %cst_41 = arith.constant dense<0.000000e+00> : vector<8x48xf32>
    %63 = tpu.matmul %26, %23, %cst_41 {dimension_numbers = #tpu.dot_dimension_numbers<[1], [0], [0], [1], [0, 0, 1, 1], [], []>} : vector<8x16xf32>, vector<16x48xf32>, vector<8x48xf32> -> vector<8x48xf32>
    %64 = vector.extract_strided_slice %62 {offsets = [0, 0], sizes = [8, 16], strides = [1, 1]} : vector<8x48xf32> to vector<8x16xf32>
    %65 = vector.extract_strided_slice %63 {offsets = [0, 0], sizes = [8, 16], strides = [1, 1]} : vector<8x48xf32> to vector<8x16xf32>
    %66 = arith.addf %64, %65 : vector<8x16xf32>
    %67 = arith.negf %66 : vector<8x16xf32>
    %68 = math.exp %67 : vector<8x16xf32>
    %cst_42 = arith.constant 1.000000e+00 : f32
    %69 = vector.broadcast %cst_42 : f32 to vector<8x16xf32>
    %70 = arith.addf %69, %68 : vector<8x16xf32>
    %71 = arith.divf %69, %70 : vector<8x16xf32>
    %72 = vector.extract_strided_slice %62 {offsets = [0, 16], sizes = [8, 16], strides = [1, 1]} : vector<8x48xf32> to vector<8x16xf32>
    %73 = vector.extract_strided_slice %63 {offsets = [0, 16], sizes = [8, 16], strides = [1, 1]} : vector<8x48xf32> to vector<8x16xf32>
    %74 = arith.addf %72, %73 : vector<8x16xf32>
    %75 = arith.negf %74 : vector<8x16xf32>
    %76 = math.exp %75 : vector<8x16xf32>
    %cst_43 = arith.constant 1.000000e+00 : f32
    %77 = vector.broadcast %cst_43 : f32 to vector<8x16xf32>
    %78 = arith.addf %77, %76 : vector<8x16xf32>
    %79 = arith.divf %77, %78 : vector<8x16xf32>
    %80 = vector.extract_strided_slice %62 {offsets = [0, 32], sizes = [8, 16], strides = [1, 1]} : vector<8x48xf32> to vector<8x16xf32>
    %81 = vector.extract_strided_slice %63 {offsets = [0, 32], sizes = [8, 16], strides = [1, 1]} : vector<8x48xf32> to vector<8x16xf32>
    %82 = vector.broadcast %25 : vector<1x16xf32> to vector<8x16xf32>
    %83 = arith.addf %81, %82 : vector<8x16xf32>
    %84 = arith.mulf %71, %83 : vector<8x16xf32>
    %85 = arith.addf %80, %84 : vector<8x16xf32>
    %86 = math.tanh %85 : vector<8x16xf32>
    %cst_44 = arith.constant 1.000000e+00 : f32
    %87 = vector.broadcast %cst_44 : f32 to vector<8x16xf32>
    %88 = arith.subf %87, %79 : vector<8x16xf32>
    %89 = arith.mulf %88, %86 : vector<8x16xf32>
    %90 = arith.mulf %79, %26 : vector<8x16xf32>
    %91 = arith.addf %89, %90 : vector<8x16xf32>
    %92 = arith.truncf %59 : vector<8x16xf32> to vector<8x16xbf16>
    %c0_45 = arith.constant 0 : index
    %93 = arith.index_cast %c0_i32 : i32 to index
    %c0_46 = arith.constant 0 : index
    %c0_47 = arith.constant 0 : index
    %94 = vector.load %arg10[%c0_45, %93, %c0_46, %c0_47] : memref<2x8x8x16xbf16, #tpu.memory_space<vmem>>, vector<1x1x8x16xbf16>
    %95 = vector.shape_cast %94 : vector<1x1x8x16xbf16> to vector<8x16xbf16>
    %96 = vector.shape_cast %92 : vector<8x16xbf16> to vector<1x1x8x16xbf16>
    tpu.vector_store %arg10[%c0_45, %93, %c0_46, %c0_47], %96 {strides = array<i32>} : memref<2x8x8x16xbf16, #tpu.memory_space<vmem>>, vector<1x1x8x16xbf16>,
    %97 = arith.truncf %91 : vector<8x16xf32> to vector<8x16xbf16>
    %c1 = arith.constant 1 : index
    %98 = arith.index_cast %27 : i32 to index
    %c0_48 = arith.constant 0 : index
    %c0_49 = arith.constant 0 : index
    %99 = vector.load %arg10[%c1, %98, %c0_48, %c0_49] : memref<2x8x8x16xbf16, #tpu.memory_space<vmem>>, vector<1x1x8x16xbf16>
    %100 = vector.shape_cast %99 : vector<1x1x8x16xbf16> to vector<8x16xbf16>
    %101 = vector.shape_cast %97 : vector<8x16xbf16> to vector<1x1x8x16xbf16>
    tpu.vector_store %arg10[%c1, %98, %c0_48, %c0_49], %101 {strides = array<i32>} : memref<2x8x8x16xbf16, #tpu.memory_space<vmem>>, vector<1x1x8x16xbf16>,
    %c1_i32 = arith.constant 1 : i32
    %c7_i32_50 = arith.constant 7 : i32
    %102 = arith.subi %c7_i32_50, %c1_i32 : i32
    %103 = arith.index_cast %c1_i32 : i32 to index
    %c0_51 = arith.constant 0 : index
    %c0_52 = arith.constant 0 : index
    %104 = vector.load %arg11[%103, %c0_51, %c0_52] : memref<8x8x48xf32, #tpu.memory_space<vmem>>, vector<1x8x48xf32>
    %105 = vector.shape_cast %104 : vector<1x8x48xf32> to vector<8x48xf32>
    %cst_53 = arith.constant dense<0.000000e+00> : vector<8x48xf32>
    %106 = tpu.matmul %59, %22, %cst_53 {dimension_numbers = #tpu.dot_dimension_numbers<[1], [0], [0], [1], [0, 0, 1, 1], [], []>} : vector<8x16xf32>, vector<16x48xf32>, vector<8x48xf32> -> vector<8x48xf32>
    %107 = vector.extract_strided_slice %105 {offsets = [0, 0], sizes = [8, 16], strides = [1, 1]} : vector<8x48xf32> to vector<8x16xf32>
    %108 = vector.extract_strided_slice %106 {offsets = [0, 0], sizes = [8, 16], strides = [1, 1]} : vector<8x48xf32> to vector<8x16xf32>
    %109 = arith.addf %107, %108 : vector<8x16xf32>
    %110 = arith.negf %109 : vector<8x16xf32>
    %111 = math.exp %110 : vector<8x16xf32>
    %cst_54 = arith.constant 1.000000e+00 : f32
    %112 = vector.broadcast %cst_54 : f32 to vector<8x16xf32>
    %113 = arith.addf %112, %111 : vector<8x16xf32>
    %114 = arith.divf %112, %113 : vector<8x16xf32>
    %115 = vector.extract_strided_slice %105 {offsets = [0, 16], sizes = [8, 16], strides = [1, 1]} : vector<8x48xf32> to vector<8x16xf32>
    %116 = vector.extract_strided_slice %106 {offsets = [0, 16], sizes = [8, 16], strides = [1, 1]} : vector<8x48xf32> to vector<8x16xf32>
    %117 = arith.addf %115, %116 : vector<8x16xf32>
    %118 = arith.negf %117 : vector<8x16xf32>
    %119 = math.exp %118 : vector<8x16xf32>
    %cst_55 = arith.constant 1.000000e+00 : f32
    %120 = vector.broadcast %cst_55 : f32 to vector<8x16xf32>
    %121 = arith.addf %120, %119 : vector<8x16xf32>
    %122 = arith.divf %120, %121 : vector<8x16xf32>
    %123 = vector.extract_strided_slice %105 {offsets = [0, 32], sizes = [8, 16], strides = [1, 1]} : vector<8x48xf32> to vector<8x16xf32>
    %124 = vector.extract_strided_slice %106 {offsets = [0, 32], sizes = [8, 16], strides = [1, 1]} : vector<8x48xf32> to vector<8x16xf32>
    %125 = vector.broadcast %24 : vector<1x16xf32> to vector<8x16xf32>
    %126 = arith.addf %124, %125 : vector<8x16xf32>
    %127 = arith.mulf %114, %126 : vector<8x16xf32>
    %128 = arith.addf %123, %127 : vector<8x16xf32>
    %129 = math.tanh %128 : vector<8x16xf32>
    %cst_56 = arith.constant 1.000000e+00 : f32
    %130 = vector.broadcast %cst_56 : f32 to vector<8x16xf32>
    %131 = arith.subf %130, %122 : vector<8x16xf32>
    %132 = arith.mulf %131, %129 : vector<8x16xf32>
    %133 = arith.mulf %122, %59 : vector<8x16xf32>
    %134 = arith.addf %132, %133 : vector<8x16xf32>
    %135 = arith.index_cast %102 : i32 to index
    %c0_57 = arith.constant 0 : index
    %c0_58 = arith.constant 0 : index
    %136 = vector.load %arg12[%135, %c0_57, %c0_58] : memref<8x8x48xf32, #tpu.memory_space<vmem>>, vector<1x8x48xf32>
    %137 = vector.shape_cast %136 : vector<1x8x48xf32> to vector<8x48xf32>
    %cst_59 = arith.constant dense<0.000000e+00> : vector<8x48xf32>
    %138 = tpu.matmul %91, %23, %cst_59 {dimension_numbers = #tpu.dot_dimension_numbers<[1], [0], [0], [1], [0, 0, 1, 1], [], []>} : vector<8x16xf32>, vector<16x48xf32>, vector<8x48xf32> -> vector<8x48xf32>
    %139 = vector.extract_strided_slice %137 {offsets = [0, 0], sizes = [8, 16], strides = [1, 1]} : vector<8x48xf32> to vector<8x16xf32>
    %140 = vector.extract_strided_slice %138 {offsets = [0, 0], sizes = [8, 16], strides = [1, 1]} : vector<8x48xf32> to vector<8x16xf32>
    %141 = arith.addf %139, %140 : vector<8x16xf32>
    %142 = arith.negf %141 : vector<8x16xf32>
    %143 = math.exp %142 : vector<8x16xf32>
    %cst_60 = arith.constant 1.000000e+00 : f32
    %144 = vector.broadcast %cst_60 : f32 to vector<8x16xf32>
    %145 = arith.addf %144, %143 : vector<8x16xf32>
    %146 = arith.divf %144, %145 : vector<8x16xf32>
    %147 = vector.extract_strided_slice %137 {offsets = [0, 16], sizes = [8, 16], strides = [1, 1]} : vector<8x48xf32> to vector<8x16xf32>
    %148 = vector.extract_strided_slice %138 {offsets = [0, 16], sizes = [8, 16], strides = [1, 1]} : vector<8x48xf32> to vector<8x16xf32>
    %149 = arith.addf %147, %148 : vector<8x16xf32>
    %150 = arith.negf %149 : vector<8x16xf32>
    %151 = math.exp %150 : vector<8x16xf32>
    %cst_61 = arith.constant 1.000000e+00 : f32
    %152 = vector.broadcast %cst_61 : f32 to vector<8x16xf32>
    %153 = arith.addf %152, %151 : vector<8x16xf32>
    %154 = arith.divf %152, %153 : vector<8x16xf32>
    %155 = vector.extract_strided_slice %137 {offsets = [0, 32], sizes = [8, 16], strides = [1, 1]} : vector<8x48xf32> to vector<8x16xf32>
    %156 = vector.extract_strided_slice %138 {offsets = [0, 32], sizes = [8, 16], strides = [1, 1]} : vector<8x48xf32> to vector<8x16xf32>
    %157 = vector.broadcast %25 : vector<1x16xf32> to vector<8x16xf32>
    %158 = arith.addf %156, %157 : vector<8x16xf32>
    %159 = arith.mulf %146, %158 : vector<8x16xf32>
    %160 = arith.addf %155, %159 : vector<8x16xf32>
    %161 = math.tanh %160 : vector<8x16xf32>
    %cst_62 = arith.constant 1.000000e+00 : f32
    %162 = vector.broadcast %cst_62 : f32 to vector<8x16xf32>
    %163 = arith.subf %162, %154 : vector<8x16xf32>
    %164 = arith.mulf %163, %161 : vector<8x16xf32>
    %165 = arith.mulf %154, %91 : vector<8x16xf32>
    %166 = arith.addf %164, %165 : vector<8x16xf32>
    %167 = arith.truncf %134 : vector<8x16xf32> to vector<8x16xbf16>
    %c0_63 = arith.constant 0 : index
    %168 = arith.index_cast %c1_i32 : i32 to index
    %c0_64 = arith.constant 0 : index
    %c0_65 = arith.constant 0 : index
    %169 = vector.load %arg10[%c0_63, %168, %c0_64, %c0_65] : memref<2x8x8x16xbf16, #tpu.memory_space<vmem>>, vector<1x1x8x16xbf16>
    %170 = vector.shape_cast %169 : vector<1x1x8x16xbf16> to vector<8x16xbf16>
    %171 = vector.shape_cast %167 : vector<8x16xbf16> to vector<1x1x8x16xbf16>
    tpu.vector_store %arg10[%c0_63, %168, %c0_64, %c0_65], %171 {strides = array<i32>} : memref<2x8x8x16xbf16, #tpu.memory_space<vmem>>, vector<1x1x8x16xbf16>,
    %172 = arith.truncf %166 : vector<8x16xf32> to vector<8x16xbf16>
    %c1_66 = arith.constant 1 : index
    %173 = arith.index_cast %102 : i32 to index
    %c0_67 = arith.constant 0 : index
    %c0_68 = arith.constant 0 : index
    %174 = vector.load %arg10[%c1_66, %173, %c0_67, %c0_68] : memref<2x8x8x16xbf16, #tpu.memory_space<vmem>>, vector<1x1x8x16xbf16>
    %175 = vector.shape_cast %174 : vector<1x1x8x16xbf16> to vector<8x16xbf16>
    %176 = vector.shape_cast %172 : vector<8x16xbf16> to vector<1x1x8x16xbf16>
    tpu.vector_store %arg10[%c1_66, %173, %c0_67, %c0_68], %176 {strides = array<i32>} : memref<2x8x8x16xbf16, #tpu.memory_space<vmem>>, vector<1x1x8x16xbf16>,
    %c2_i32 = arith.constant 2 : i32
    %c7_i32_69 = arith.constant 7 : i32
    %177 = arith.subi %c7_i32_69, %c2_i32 : i32
    %178 = arith.index_cast %c2_i32 : i32 to index
    %c0_70 = arith.constant 0 : index
    %c0_71 = arith.constant 0 : index
    %179 = vector.load %arg11[%178, %c0_70, %c0_71] : memref<8x8x48xf32, #tpu.memory_space<vmem>>, vector<1x8x48xf32>
    %180 = vector.shape_cast %179 : vector<1x8x48xf32> to vector<8x48xf32>
    %cst_72 = arith.constant dense<0.000000e+00> : vector<8x48xf32>
    %181 = tpu.matmul %134, %22, %cst_72 {dimension_numbers = #tpu.dot_dimension_numbers<[1], [0], [0], [1], [0, 0, 1, 1], [], []>} : vector<8x16xf32>, vector<16x48xf32>, vector<8x48xf32> -> vector<8x48xf32>
    %182 = vector.extract_strided_slice %180 {offsets = [0, 0], sizes = [8, 16], strides = [1, 1]} : vector<8x48xf32> to vector<8x16xf32>
    %183 = vector.extract_strided_slice %181 {offsets = [0, 0], sizes = [8, 16], strides = [1, 1]} : vector<8x48xf32> to vector<8x16xf32>
    %184 = arith.addf %182, %183 : vector<8x16xf32>
    %185 = arith.negf %184 : vector<8x16xf32>
    %186 = math.exp %185 : vector<8x16xf32>
    %cst_73 = arith.constant 1.000000e+00 : f32
    %187 = vector.broadcast %cst_73 : f32 to vector<8x16xf32>
    %188 = arith.addf %187, %186 : vector<8x16xf32>
    %189 = arith.divf %187, %188 : vector<8x16xf32>
    %190 = vector.extract_strided_slice %180 {offsets = [0, 16], sizes = [8, 16], strides = [1, 1]} : vector<8x48xf32> to vector<8x16xf32>
    %191 = vector.extract_strided_slice %181 {offsets = [0, 16], sizes = [8, 16], strides = [1, 1]} : vector<8x48xf32> to vector<8x16xf32>
    %192 = arith.addf %190, %191 : vector<8x16xf32>
    %193 = arith.negf %192 : vector<8x16xf32>
    %194 = math.exp %193 : vector<8x16xf32>
    %cst_74 = arith.constant 1.000000e+00 : f32
    %195 = vector.broadcast %cst_74 : f32 to vector<8x16xf32>
    %196 = arith.addf %195, %194 : vector<8x16xf32>
    %197 = arith.divf %195, %196 : vector<8x16xf32>
    %198 = vector.extract_strided_slice %180 {offsets = [0, 32], sizes = [8, 16], strides = [1, 1]} : vector<8x48xf32> to vector<8x16xf32>
    %199 = vector.extract_strided_slice %181 {offsets = [0, 32], sizes = [8, 16], strides = [1, 1]} : vector<8x48xf32> to vector<8x16xf32>
    %200 = vector.broadcast %24 : vector<1x16xf32> to vector<8x16xf32>
    %201 = arith.addf %199, %200 : vector<8x16xf32>
    %202 = arith.mulf %189, %201 : vector<8x16xf32>
    %203 = arith.addf %198, %202 : vector<8x16xf32>
    %204 = math.tanh %203 : vector<8x16xf32>
    %cst_75 = arith.constant 1.000000e+00 : f32
    %205 = vector.broadcast %cst_75 : f32 to vector<8x16xf32>
    %206 = arith.subf %205, %197 : vector<8x16xf32>
    %207 = arith.mulf %206, %204 : vector<8x16xf32>
    %208 = arith.mulf %197, %134 : vector<8x16xf32>
    %209 = arith.addf %207, %208 : vector<8x16xf32>
    %210 = arith.index_cast %177 : i32 to index
    %c0_76 = arith.constant 0 : index
    %c0_77 = arith.constant 0 : index
    %211 = vector.load %arg12[%210, %c0_76, %c0_77] : memref<8x8x48xf32, #tpu.memory_space<vmem>>, vector<1x8x48xf32>
    %212 = vector.shape_cast %211 : vector<1x8x48xf32> to vector<8x48xf32>
    %cst_78 = arith.constant dense<0.000000e+00> : vector<8x48xf32>
    %213 = tpu.matmul %166, %23, %cst_78 {dimension_numbers = #tpu.dot_dimension_numbers<[1], [0], [0], [1], [0, 0, 1, 1], [], []>} : vector<8x16xf32>, vector<16x48xf32>, vector<8x48xf32> -> vector<8x48xf32>
    %214 = vector.extract_strided_slice %212 {offsets = [0, 0], sizes = [8, 16], strides = [1, 1]} : vector<8x48xf32> to vector<8x16xf32>
    %215 = vector.extract_strided_slice %213 {offsets = [0, 0], sizes = [8, 16], strides = [1, 1]} : vector<8x48xf32> to vector<8x16xf32>
    %216 = arith.addf %214, %215 : vector<8x16xf32>
    %217 = arith.negf %216 : vector<8x16xf32>
    %218 = math.exp %217 : vector<8x16xf32>
    %cst_79 = arith.constant 1.000000e+00 : f32
    %219 = vector.broadcast %cst_79 : f32 to vector<8x16xf32>
    %220 = arith.addf %219, %218 : vector<8x16xf32>
    %221 = arith.divf %219, %220 : vector<8x16xf32>
    %222 = vector.extract_strided_slice %212 {offsets = [0, 16], sizes = [8, 16], strides = [1, 1]} : vector<8x48xf32> to vector<8x16xf32>
    %223 = vector.extract_strided_slice %213 {offsets = [0, 16], sizes = [8, 16], strides = [1, 1]} : vector<8x48xf32> to vector<8x16xf32>
    %224 = arith.addf %222, %223 : vector<8x16xf32>
    %225 = arith.negf %224 : vector<8x16xf32>
    %226 = math.exp %225 : vector<8x16xf32>
    %cst_80 = arith.constant 1.000000e+00 : f32
    %227 = vector.broadcast %cst_80 : f32 to vector<8x16xf32>
    %228 = arith.addf %227, %226 : vector<8x16xf32>
    %229 = arith.divf %227, %228 : vector<8x16xf32>
    %230 = vector.extract_strided_slice %212 {offsets = [0, 32], sizes = [8, 16], strides = [1, 1]} : vector<8x48xf32> to vector<8x16xf32>
    %231 = vector.extract_strided_slice %213 {offsets = [0, 32], sizes = [8, 16], strides = [1, 1]} : vector<8x48xf32> to vector<8x16xf32>
    %232 = vector.broadcast %25 : vector<1x16xf32> to vector<8x16xf32>
    %233 = arith.addf %231, %232 : vector<8x16xf32>
    %234 = arith.mulf %221, %233 : vector<8x16xf32>
    %235 = arith.addf %230, %234 : vector<8x16xf32>
    %236 = math.tanh %235 : vector<8x16xf32>
    %cst_81 = arith.constant 1.000000e+00 : f32
    %237 = vector.broadcast %cst_81 : f32 to vector<8x16xf32>
    %238 = arith.subf %237, %229 : vector<8x16xf32>
    %239 = arith.mulf %238, %236 : vector<8x16xf32>
    %240 = arith.mulf %229, %166 : vector<8x16xf32>
    %241 = arith.addf %239, %240 : vector<8x16xf32>
    %242 = arith.truncf %209 : vector<8x16xf32> to vector<8x16xbf16>
    %c0_82 = arith.constant 0 : index
    %243 = arith.index_cast %c2_i32 : i32 to index
    %c0_83 = arith.constant 0 : index
    %c0_84 = arith.constant 0 : index
    %244 = vector.load %arg10[%c0_82, %243, %c0_83, %c0_84] : memref<2x8x8x16xbf16, #tpu.memory_space<vmem>>, vector<1x1x8x16xbf16>
    %245 = vector.shape_cast %244 : vector<1x1x8x16xbf16> to vector<8x16xbf16>
    %246 = vector.shape_cast %242 : vector<8x16xbf16> to vector<1x1x8x16xbf16>
    tpu.vector_store %arg10[%c0_82, %243, %c0_83, %c0_84], %246 {strides = array<i32>} : memref<2x8x8x16xbf16, #tpu.memory_space<vmem>>, vector<1x1x8x16xbf16>,
    %247 = arith.truncf %241 : vector<8x16xf32> to vector<8x16xbf16>
    %c1_85 = arith.constant 1 : index
    %248 = arith.index_cast %177 : i32 to index
    %c0_86 = arith.constant 0 : index
    %c0_87 = arith.constant 0 : index
    %249 = vector.load %arg10[%c1_85, %248, %c0_86, %c0_87] : memref<2x8x8x16xbf16, #tpu.memory_space<vmem>>, vector<1x1x8x16xbf16>
    %250 = vector.shape_cast %249 : vector<1x1x8x16xbf16> to vector<8x16xbf16>
    %251 = vector.shape_cast %247 : vector<8x16xbf16> to vector<1x1x8x16xbf16>
    tpu.vector_store %arg10[%c1_85, %248, %c0_86, %c0_87], %251 {strides = array<i32>} : memref<2x8x8x16xbf16, #tpu.memory_space<vmem>>, vector<1x1x8x16xbf16>,
    %c3_i32 = arith.constant 3 : i32
    %c7_i32_88 = arith.constant 7 : i32
    %252 = arith.subi %c7_i32_88, %c3_i32 : i32
    %253 = arith.index_cast %c3_i32 : i32 to index
    %c0_89 = arith.constant 0 : index
    %c0_90 = arith.constant 0 : index
    %254 = vector.load %arg11[%253, %c0_89, %c0_90] : memref<8x8x48xf32, #tpu.memory_space<vmem>>, vector<1x8x48xf32>
    %255 = vector.shape_cast %254 : vector<1x8x48xf32> to vector<8x48xf32>
    %cst_91 = arith.constant dense<0.000000e+00> : vector<8x48xf32>
    %256 = tpu.matmul %209, %22, %cst_91 {dimension_numbers = #tpu.dot_dimension_numbers<[1], [0], [0], [1], [0, 0, 1, 1], [], []>} : vector<8x16xf32>, vector<16x48xf32>, vector<8x48xf32> -> vector<8x48xf32>
    %257 = vector.extract_strided_slice %255 {offsets = [0, 0], sizes = [8, 16], strides = [1, 1]} : vector<8x48xf32> to vector<8x16xf32>
    %258 = vector.extract_strided_slice %256 {offsets = [0, 0], sizes = [8, 16], strides = [1, 1]} : vector<8x48xf32> to vector<8x16xf32>
    %259 = arith.addf %257, %258 : vector<8x16xf32>
    %260 = arith.negf %259 : vector<8x16xf32>
    %261 = math.exp %260 : vector<8x16xf32>
    %cst_92 = arith.constant 1.000000e+00 : f32
    %262 = vector.broadcast %cst_92 : f32 to vector<8x16xf32>
    %263 = arith.addf %262, %261 : vector<8x16xf32>
    %264 = arith.divf %262, %263 : vector<8x16xf32>
    %265 = vector.extract_strided_slice %255 {offsets = [0, 16], sizes = [8, 16], strides = [1, 1]} : vector<8x48xf32> to vector<8x16xf32>
    %266 = vector.extract_strided_slice %256 {offsets = [0, 16], sizes = [8, 16], strides = [1, 1]} : vector<8x48xf32> to vector<8x16xf32>
    %267 = arith.addf %265, %266 : vector<8x16xf32>
    %268 = arith.negf %267 : vector<8x16xf32>
    %269 = math.exp %268 : vector<8x16xf32>
    %cst_93 = arith.constant 1.000000e+00 : f32
    %270 = vector.broadcast %cst_93 : f32 to vector<8x16xf32>
    %271 = arith.addf %270, %269 : vector<8x16xf32>
    %272 = arith.divf %270, %271 : vector<8x16xf32>
    %273 = vector.extract_strided_slice %255 {offsets = [0, 32], sizes = [8, 16], strides = [1, 1]} : vector<8x48xf32> to vector<8x16xf32>
    %274 = vector.extract_strided_slice %256 {offsets = [0, 32], sizes = [8, 16], strides = [1, 1]} : vector<8x48xf32> to vector<8x16xf32>
    %275 = vector.broadcast %24 : vector<1x16xf32> to vector<8x16xf32>
    %276 = arith.addf %274, %275 : vector<8x16xf32>
    %277 = arith.mulf %264, %276 : vector<8x16xf32>
    %278 = arith.addf %273, %277 : vector<8x16xf32>
    %279 = math.tanh %278 : vector<8x16xf32>
    %cst_94 = arith.constant 1.000000e+00 : f32
    %280 = vector.broadcast %cst_94 : f32 to vector<8x16xf32>
    %281 = arith.subf %280, %272 : vector<8x16xf32>
    %282 = arith.mulf %281, %279 : vector<8x16xf32>
    %283 = arith.mulf %272, %209 : vector<8x16xf32>
    %284 = arith.addf %282, %283 : vector<8x16xf32>
    %285 = arith.index_cast %252 : i32 to index
    %c0_95 = arith.constant 0 : index
    %c0_96 = arith.constant 0 : index
    %286 = vector.load %arg12[%285, %c0_95, %c0_96] : memref<8x8x48xf32, #tpu.memory_space<vmem>>, vector<1x8x48xf32>
    %287 = vector.shape_cast %286 : vector<1x8x48xf32> to vector<8x48xf32>
    %cst_97 = arith.constant dense<0.000000e+00> : vector<8x48xf32>
    %288 = tpu.matmul %241, %23, %cst_97 {dimension_numbers = #tpu.dot_dimension_numbers<[1], [0], [0], [1], [0, 0, 1, 1], [], []>} : vector<8x16xf32>, vector<16x48xf32>, vector<8x48xf32> -> vector<8x48xf32>
    %289 = vector.extract_strided_slice %287 {offsets = [0, 0], sizes = [8, 16], strides = [1, 1]} : vector<8x48xf32> to vector<8x16xf32>
    %290 = vector.extract_strided_slice %288 {offsets = [0, 0], sizes = [8, 16], strides = [1, 1]} : vector<8x48xf32> to vector<8x16xf32>
    %291 = arith.addf %289, %290 : vector<8x16xf32>
    %292 = arith.negf %291 : vector<8x16xf32>
    %293 = math.exp %292 : vector<8x16xf32>
    %cst_98 = arith.constant 1.000000e+00 : f32
    %294 = vector.broadcast %cst_98 : f32 to vector<8x16xf32>
    %295 = arith.addf %294, %293 : vector<8x16xf32>
    %296 = arith.divf %294, %295 : vector<8x16xf32>
    %297 = vector.extract_strided_slice %287 {offsets = [0, 16], sizes = [8, 16], strides = [1, 1]} : vector<8x48xf32> to vector<8x16xf32>
    %298 = vector.extract_strided_slice %288 {offsets = [0, 16], sizes = [8, 16], strides = [1, 1]} : vector<8x48xf32> to vector<8x16xf32>
    %299 = arith.addf %297, %298 : vector<8x16xf32>
    %300 = arith.negf %299 : vector<8x16xf32>
    %301 = math.exp %300 : vector<8x16xf32>
    %cst_99 = arith.constant 1.000000e+00 : f32
    %302 = vector.broadcast %cst_99 : f32 to vector<8x16xf32>
    %303 = arith.addf %302, %301 : vector<8x16xf32>
    %304 = arith.divf %302, %303 : vector<8x16xf32>
    %305 = vector.extract_strided_slice %287 {offsets = [0, 32], sizes = [8, 16], strides = [1, 1]} : vector<8x48xf32> to vector<8x16xf32>
    %306 = vector.extract_strided_slice %288 {offsets = [0, 32], sizes = [8, 16], strides = [1, 1]} : vector<8x48xf32> to vector<8x16xf32>
    %307 = vector.broadcast %25 : vector<1x16xf32> to vector<8x16xf32>
    %308 = arith.addf %306, %307 : vector<8x16xf32>
    %309 = arith.mulf %296, %308 : vector<8x16xf32>
    %310 = arith.addf %305, %309 : vector<8x16xf32>
    %311 = math.tanh %310 : vector<8x16xf32>
    %cst_100 = arith.constant 1.000000e+00 : f32
    %312 = vector.broadcast %cst_100 : f32 to vector<8x16xf32>
    %313 = arith.subf %312, %304 : vector<8x16xf32>
    %314 = arith.mulf %313, %311 : vector<8x16xf32>
    %315 = arith.mulf %304, %241 : vector<8x16xf32>
    %316 = arith.addf %314, %315 : vector<8x16xf32>
    %317 = arith.truncf %284 : vector<8x16xf32> to vector<8x16xbf16>
    %c0_101 = arith.constant 0 : index
    %318 = arith.index_cast %c3_i32 : i32 to index
    %c0_102 = arith.constant 0 : index
    %c0_103 = arith.constant 0 : index
    %319 = vector.load %arg10[%c0_101, %318, %c0_102, %c0_103] : memref<2x8x8x16xbf16, #tpu.memory_space<vmem>>, vector<1x1x8x16xbf16>
    %320 = vector.shape_cast %319 : vector<1x1x8x16xbf16> to vector<8x16xbf16>
    %321 = vector.shape_cast %317 : vector<8x16xbf16> to vector<1x1x8x16xbf16>
    tpu.vector_store %arg10[%c0_101, %318, %c0_102, %c0_103], %321 {strides = array<i32>} : memref<2x8x8x16xbf16, #tpu.memory_space<vmem>>, vector<1x1x8x16xbf16>,
    %322 = arith.truncf %316 : vector<8x16xf32> to vector<8x16xbf16>
    %c1_104 = arith.constant 1 : index
    %323 = arith.index_cast %252 : i32 to index
    %c0_105 = arith.constant 0 : index
    %c0_106 = arith.constant 0 : index
    %324 = vector.load %arg10[%c1_104, %323, %c0_105, %c0_106] : memref<2x8x8x16xbf16, #tpu.memory_space<vmem>>, vector<1x1x8x16xbf16>
    %325 = vector.shape_cast %324 : vector<1x1x8x16xbf16> to vector<8x16xbf16>
    %326 = vector.shape_cast %322 : vector<8x16xbf16> to vector<1x1x8x16xbf16>
    tpu.vector_store %arg10[%c1_104, %323, %c0_105, %c0_106], %326 {strides = array<i32>} : memref<2x8x8x16xbf16, #tpu.memory_space<vmem>>, vector<1x1x8x16xbf16>,
    %c4_i32 = arith.constant 4 : i32
    %c7_i32_107 = arith.constant 7 : i32
    %327 = arith.subi %c7_i32_107, %c4_i32 : i32
    %328 = arith.index_cast %c4_i32 : i32 to index
    %c0_108 = arith.constant 0 : index
    %c0_109 = arith.constant 0 : index
    %329 = vector.load %arg11[%328, %c0_108, %c0_109] : memref<8x8x48xf32, #tpu.memory_space<vmem>>, vector<1x8x48xf32>
    %330 = vector.shape_cast %329 : vector<1x8x48xf32> to vector<8x48xf32>
    %cst_110 = arith.constant dense<0.000000e+00> : vector<8x48xf32>
    %331 = tpu.matmul %284, %22, %cst_110 {dimension_numbers = #tpu.dot_dimension_numbers<[1], [0], [0], [1], [0, 0, 1, 1], [], []>} : vector<8x16xf32>, vector<16x48xf32>, vector<8x48xf32> -> vector<8x48xf32>
    %332 = vector.extract_strided_slice %330 {offsets = [0, 0], sizes = [8, 16], strides = [1, 1]} : vector<8x48xf32> to vector<8x16xf32>
    %333 = vector.extract_strided_slice %331 {offsets = [0, 0], sizes = [8, 16], strides = [1, 1]} : vector<8x48xf32> to vector<8x16xf32>
    %334 = arith.addf %332, %333 : vector<8x16xf32>
    %335 = arith.negf %334 : vector<8x16xf32>
    %336 = math.exp %335 : vector<8x16xf32>
    %cst_111 = arith.constant 1.000000e+00 : f32
    %337 = vector.broadcast %cst_111 : f32 to vector<8x16xf32>
    %338 = arith.addf %337, %336 : vector<8x16xf32>
    %339 = arith.divf %337, %338 : vector<8x16xf32>
    %340 = vector.extract_strided_slice %330 {offsets = [0, 16], sizes = [8, 16], strides = [1, 1]} : vector<8x48xf32> to vector<8x16xf32>
    %341 = vector.extract_strided_slice %331 {offsets = [0, 16], sizes = [8, 16], strides = [1, 1]} : vector<8x48xf32> to vector<8x16xf32>
    %342 = arith.addf %340, %341 : vector<8x16xf32>
    %343 = arith.negf %342 : vector<8x16xf32>
    %344 = math.exp %343 : vector<8x16xf32>
    %cst_112 = arith.constant 1.000000e+00 : f32
    %345 = vector.broadcast %cst_112 : f32 to vector<8x16xf32>
    %346 = arith.addf %345, %344 : vector<8x16xf32>
    %347 = arith.divf %345, %346 : vector<8x16xf32>
    %348 = vector.extract_strided_slice %330 {offsets = [0, 32], sizes = [8, 16], strides = [1, 1]} : vector<8x48xf32> to vector<8x16xf32>
    %349 = vector.extract_strided_slice %331 {offsets = [0, 32], sizes = [8, 16], strides = [1, 1]} : vector<8x48xf32> to vector<8x16xf32>
    %350 = vector.broadcast %24 : vector<1x16xf32> to vector<8x16xf32>
    %351 = arith.addf %349, %350 : vector<8x16xf32>
    %352 = arith.mulf %339, %351 : vector<8x16xf32>
    %353 = arith.addf %348, %352 : vector<8x16xf32>
    %354 = math.tanh %353 : vector<8x16xf32>
    %cst_113 = arith.constant 1.000000e+00 : f32
    %355 = vector.broadcast %cst_113 : f32 to vector<8x16xf32>
    %356 = arith.subf %355, %347 : vector<8x16xf32>
    %357 = arith.mulf %356, %354 : vector<8x16xf32>
    %358 = arith.mulf %347, %284 : vector<8x16xf32>
    %359 = arith.addf %357, %358 : vector<8x16xf32>
    %360 = arith.index_cast %327 : i32 to index
    %c0_114 = arith.constant 0 : index
    %c0_115 = arith.constant 0 : index
    %361 = vector.load %arg12[%360, %c0_114, %c0_115] : memref<8x8x48xf32, #tpu.memory_space<vmem>>, vector<1x8x48xf32>
    %362 = vector.shape_cast %361 : vector<1x8x48xf32> to vector<8x48xf32>
    %cst_116 = arith.constant dense<0.000000e+00> : vector<8x48xf32>
    %363 = tpu.matmul %316, %23, %cst_116 {dimension_numbers = #tpu.dot_dimension_numbers<[1], [0], [0], [1], [0, 0, 1, 1], [], []>} : vector<8x16xf32>, vector<16x48xf32>, vector<8x48xf32> -> vector<8x48xf32>
    %364 = vector.extract_strided_slice %362 {offsets = [0, 0], sizes = [8, 16], strides = [1, 1]} : vector<8x48xf32> to vector<8x16xf32>
    %365 = vector.extract_strided_slice %363 {offsets = [0, 0], sizes = [8, 16], strides = [1, 1]} : vector<8x48xf32> to vector<8x16xf32>
    %366 = arith.addf %364, %365 : vector<8x16xf32>
    %367 = arith.negf %366 : vector<8x16xf32>
    %368 = math.exp %367 : vector<8x16xf32>
    %cst_117 = arith.constant 1.000000e+00 : f32
    %369 = vector.broadcast %cst_117 : f32 to vector<8x16xf32>
    %370 = arith.addf %369, %368 : vector<8x16xf32>
    %371 = arith.divf %369, %370 : vector<8x16xf32>
    %372 = vector.extract_strided_slice %362 {offsets = [0, 16], sizes = [8, 16], strides = [1, 1]} : vector<8x48xf32> to vector<8x16xf32>
    %373 = vector.extract_strided_slice %363 {offsets = [0, 16], sizes = [8, 16], strides = [1, 1]} : vector<8x48xf32> to vector<8x16xf32>
    %374 = arith.addf %372, %373 : vector<8x16xf32>
    %375 = arith.negf %374 : vector<8x16xf32>
    %376 = math.exp %375 : vector<8x16xf32>
    %cst_118 = arith.constant 1.000000e+00 : f32
    %377 = vector.broadcast %cst_118 : f32 to vector<8x16xf32>
    %378 = arith.addf %377, %376 : vector<8x16xf32>
    %379 = arith.divf %377, %378 : vector<8x16xf32>
    %380 = vector.extract_strided_slice %362 {offsets = [0, 32], sizes = [8, 16], strides = [1, 1]} : vector<8x48xf32> to vector<8x16xf32>
    %381 = vector.extract_strided_slice %363 {offsets = [0, 32], sizes = [8, 16], strides = [1, 1]} : vector<8x48xf32> to vector<8x16xf32>
    %382 = vector.broadcast %25 : vector<1x16xf32> to vector<8x16xf32>
    %383 = arith.addf %381, %382 : vector<8x16xf32>
    %384 = arith.mulf %371, %383 : vector<8x16xf32>
    %385 = arith.addf %380, %384 : vector<8x16xf32>
    %386 = math.tanh %385 : vector<8x16xf32>
    %cst_119 = arith.constant 1.000000e+00 : f32
    %387 = vector.broadcast %cst_119 : f32 to vector<8x16xf32>
    %388 = arith.subf %387, %379 : vector<8x16xf32>
    %389 = arith.mulf %388, %386 : vector<8x16xf32>
    %390 = arith.mulf %379, %316 : vector<8x16xf32>
    %391 = arith.addf %389, %390 : vector<8x16xf32>
    %392 = arith.truncf %359 : vector<8x16xf32> to vector<8x16xbf16>
    %c0_120 = arith.constant 0 : index
    %393 = arith.index_cast %c4_i32 : i32 to index
    %c0_121 = arith.constant 0 : index
    %c0_122 = arith.constant 0 : index
    %394 = vector.load %arg10[%c0_120, %393, %c0_121, %c0_122] : memref<2x8x8x16xbf16, #tpu.memory_space<vmem>>, vector<1x1x8x16xbf16>
    %395 = vector.shape_cast %394 : vector<1x1x8x16xbf16> to vector<8x16xbf16>
    %396 = vector.shape_cast %392 : vector<8x16xbf16> to vector<1x1x8x16xbf16>
    tpu.vector_store %arg10[%c0_120, %393, %c0_121, %c0_122], %396 {strides = array<i32>} : memref<2x8x8x16xbf16, #tpu.memory_space<vmem>>, vector<1x1x8x16xbf16>,
    %397 = arith.truncf %391 : vector<8x16xf32> to vector<8x16xbf16>
    %c1_123 = arith.constant 1 : index
    %398 = arith.index_cast %327 : i32 to index
    %c0_124 = arith.constant 0 : index
    %c0_125 = arith.constant 0 : index
    %399 = vector.load %arg10[%c1_123, %398, %c0_124, %c0_125] : memref<2x8x8x16xbf16, #tpu.memory_space<vmem>>, vector<1x1x8x16xbf16>
    %400 = vector.shape_cast %399 : vector<1x1x8x16xbf16> to vector<8x16xbf16>
    %401 = vector.shape_cast %397 : vector<8x16xbf16> to vector<1x1x8x16xbf16>
    tpu.vector_store %arg10[%c1_123, %398, %c0_124, %c0_125], %401 {strides = array<i32>} : memref<2x8x8x16xbf16, #tpu.memory_space<vmem>>, vector<1x1x8x16xbf16>,
    %c5_i32 = arith.constant 5 : i32
    %c7_i32_126 = arith.constant 7 : i32
    %402 = arith.subi %c7_i32_126, %c5_i32 : i32
    %403 = arith.index_cast %c5_i32 : i32 to index
    %c0_127 = arith.constant 0 : index
    %c0_128 = arith.constant 0 : index
    %404 = vector.load %arg11[%403, %c0_127, %c0_128] : memref<8x8x48xf32, #tpu.memory_space<vmem>>, vector<1x8x48xf32>
    %405 = vector.shape_cast %404 : vector<1x8x48xf32> to vector<8x48xf32>
    %cst_129 = arith.constant dense<0.000000e+00> : vector<8x48xf32>
    %406 = tpu.matmul %359, %22, %cst_129 {dimension_numbers = #tpu.dot_dimension_numbers<[1], [0], [0], [1], [0, 0, 1, 1], [], []>} : vector<8x16xf32>, vector<16x48xf32>, vector<8x48xf32> -> vector<8x48xf32>
    %407 = vector.extract_strided_slice %405 {offsets = [0, 0], sizes = [8, 16], strides = [1, 1]} : vector<8x48xf32> to vector<8x16xf32>
    %408 = vector.extract_strided_slice %406 {offsets = [0, 0], sizes = [8, 16], strides = [1, 1]} : vector<8x48xf32> to vector<8x16xf32>
    %409 = arith.addf %407, %408 : vector<8x16xf32>
    %410 = arith.negf %409 : vector<8x16xf32>
    %411 = math.exp %410 : vector<8x16xf32>
    %cst_130 = arith.constant 1.000000e+00 : f32
    %412 = vector.broadcast %cst_130 : f32 to vector<8x16xf32>
    %413 = arith.addf %412, %411 : vector<8x16xf32>
    %414 = arith.divf %412, %413 : vector<8x16xf32>
    %415 = vector.extract_strided_slice %405 {offsets = [0, 16], sizes = [8, 16], strides = [1, 1]} : vector<8x48xf32> to vector<8x16xf32>
    %416 = vector.extract_strided_slice %406 {offsets = [0, 16], sizes = [8, 16], strides = [1, 1]} : vector<8x48xf32> to vector<8x16xf32>
    %417 = arith.addf %415, %416 : vector<8x16xf32>
    %418 = arith.negf %417 : vector<8x16xf32>
    %419 = math.exp %418 : vector<8x16xf32>
    %cst_131 = arith.constant 1.000000e+00 : f32
    %420 = vector.broadcast %cst_131 : f32 to vector<8x16xf32>
    %421 = arith.addf %420, %419 : vector<8x16xf32>
    %422 = arith.divf %420, %421 : vector<8x16xf32>
    %423 = vector.extract_strided_slice %405 {offsets = [0, 32], sizes = [8, 16], strides = [1, 1]} : vector<8x48xf32> to vector<8x16xf32>
    %424 = vector.extract_strided_slice %406 {offsets = [0, 32], sizes = [8, 16], strides = [1, 1]} : vector<8x48xf32> to vector<8x16xf32>
    %425 = vector.broadcast %24 : vector<1x16xf32> to vector<8x16xf32>
    %426 = arith.addf %424, %425 : vector<8x16xf32>
    %427 = arith.mulf %414, %426 : vector<8x16xf32>
    %428 = arith.addf %423, %427 : vector<8x16xf32>
    %429 = math.tanh %428 : vector<8x16xf32>
    %cst_132 = arith.constant 1.000000e+00 : f32
    %430 = vector.broadcast %cst_132 : f32 to vector<8x16xf32>
    %431 = arith.subf %430, %422 : vector<8x16xf32>
    %432 = arith.mulf %431, %429 : vector<8x16xf32>
    %433 = arith.mulf %422, %359 : vector<8x16xf32>
    %434 = arith.addf %432, %433 : vector<8x16xf32>
    %435 = arith.index_cast %402 : i32 to index
    %c0_133 = arith.constant 0 : index
    %c0_134 = arith.constant 0 : index
    %436 = vector.load %arg12[%435, %c0_133, %c0_134] : memref<8x8x48xf32, #tpu.memory_space<vmem>>, vector<1x8x48xf32>
    %437 = vector.shape_cast %436 : vector<1x8x48xf32> to vector<8x48xf32>
    %cst_135 = arith.constant dense<0.000000e+00> : vector<8x48xf32>
    %438 = tpu.matmul %391, %23, %cst_135 {dimension_numbers = #tpu.dot_dimension_numbers<[1], [0], [0], [1], [0, 0, 1, 1], [], []>} : vector<8x16xf32>, vector<16x48xf32>, vector<8x48xf32> -> vector<8x48xf32>
    %439 = vector.extract_strided_slice %437 {offsets = [0, 0], sizes = [8, 16], strides = [1, 1]} : vector<8x48xf32> to vector<8x16xf32>
    %440 = vector.extract_strided_slice %438 {offsets = [0, 0], sizes = [8, 16], strides = [1, 1]} : vector<8x48xf32> to vector<8x16xf32>
    %441 = arith.addf %439, %440 : vector<8x16xf32>
    %442 = arith.negf %441 : vector<8x16xf32>
    %443 = math.exp %442 : vector<8x16xf32>
    %cst_136 = arith.constant 1.000000e+00 : f32
    %444 = vector.broadcast %cst_136 : f32 to vector<8x16xf32>
    %445 = arith.addf %444, %443 : vector<8x16xf32>
    %446 = arith.divf %444, %445 : vector<8x16xf32>
    %447 = vector.extract_strided_slice %437 {offsets = [0, 16], sizes = [8, 16], strides = [1, 1]} : vector<8x48xf32> to vector<8x16xf32>
    %448 = vector.extract_strided_slice %438 {offsets = [0, 16], sizes = [8, 16], strides = [1, 1]} : vector<8x48xf32> to vector<8x16xf32>
    %449 = arith.addf %447, %448 : vector<8x16xf32>
    %450 = arith.negf %449 : vector<8x16xf32>
    %451 = math.exp %450 : vector<8x16xf32>
    %cst_137 = arith.constant 1.000000e+00 : f32
    %452 = vector.broadcast %cst_137 : f32 to vector<8x16xf32>
    %453 = arith.addf %452, %451 : vector<8x16xf32>
    %454 = arith.divf %452, %453 : vector<8x16xf32>
    %455 = vector.extract_strided_slice %437 {offsets = [0, 32], sizes = [8, 16], strides = [1, 1]} : vector<8x48xf32> to vector<8x16xf32>
    %456 = vector.extract_strided_slice %438 {offsets = [0, 32], sizes = [8, 16], strides = [1, 1]} : vector<8x48xf32> to vector<8x16xf32>
    %457 = vector.broadcast %25 : vector<1x16xf32> to vector<8x16xf32>
    %458 = arith.addf %456, %457 : vector<8x16xf32>
    %459 = arith.mulf %446, %458 : vector<8x16xf32>
    %460 = arith.addf %455, %459 : vector<8x16xf32>
    %461 = math.tanh %460 : vector<8x16xf32>
    %cst_138 = arith.constant 1.000000e+00 : f32
    %462 = vector.broadcast %cst_138 : f32 to vector<8x16xf32>
    %463 = arith.subf %462, %454 : vector<8x16xf32>
    %464 = arith.mulf %463, %461 : vector<8x16xf32>
    %465 = arith.mulf %454, %391 : vector<8x16xf32>
    %466 = arith.addf %464, %465 : vector<8x16xf32>
    %467 = arith.truncf %434 : vector<8x16xf32> to vector<8x16xbf16>
    %c0_139 = arith.constant 0 : index
    %468 = arith.index_cast %c5_i32 : i32 to index
    %c0_140 = arith.constant 0 : index
    %c0_141 = arith.constant 0 : index
    %469 = vector.load %arg10[%c0_139, %468, %c0_140, %c0_141] : memref<2x8x8x16xbf16, #tpu.memory_space<vmem>>, vector<1x1x8x16xbf16>
    %470 = vector.shape_cast %469 : vector<1x1x8x16xbf16> to vector<8x16xbf16>
    %471 = vector.shape_cast %467 : vector<8x16xbf16> to vector<1x1x8x16xbf16>
    tpu.vector_store %arg10[%c0_139, %468, %c0_140, %c0_141], %471 {strides = array<i32>} : memref<2x8x8x16xbf16, #tpu.memory_space<vmem>>, vector<1x1x8x16xbf16>,
    %472 = arith.truncf %466 : vector<8x16xf32> to vector<8x16xbf16>
    %c1_142 = arith.constant 1 : index
    %473 = arith.index_cast %402 : i32 to index
    %c0_143 = arith.constant 0 : index
    %c0_144 = arith.constant 0 : index
    %474 = vector.load %arg10[%c1_142, %473, %c0_143, %c0_144] : memref<2x8x8x16xbf16, #tpu.memory_space<vmem>>, vector<1x1x8x16xbf16>
    %475 = vector.shape_cast %474 : vector<1x1x8x16xbf16> to vector<8x16xbf16>
    %476 = vector.shape_cast %472 : vector<8x16xbf16> to vector<1x1x8x16xbf16>
    tpu.vector_store %arg10[%c1_142, %473, %c0_143, %c0_144], %476 {strides = array<i32>} : memref<2x8x8x16xbf16, #tpu.memory_space<vmem>>, vector<1x1x8x16xbf16>,
    %c6_i32 = arith.constant 6 : i32
    %c7_i32_145 = arith.constant 7 : i32
    %477 = arith.subi %c7_i32_145, %c6_i32 : i32
    %478 = arith.index_cast %c6_i32 : i32 to index
    %c0_146 = arith.constant 0 : index
    %c0_147 = arith.constant 0 : index
    %479 = vector.load %arg11[%478, %c0_146, %c0_147] : memref<8x8x48xf32, #tpu.memory_space<vmem>>, vector<1x8x48xf32>
    %480 = vector.shape_cast %479 : vector<1x8x48xf32> to vector<8x48xf32>
    %cst_148 = arith.constant dense<0.000000e+00> : vector<8x48xf32>
    %481 = tpu.matmul %434, %22, %cst_148 {dimension_numbers = #tpu.dot_dimension_numbers<[1], [0], [0], [1], [0, 0, 1, 1], [], []>} : vector<8x16xf32>, vector<16x48xf32>, vector<8x48xf32> -> vector<8x48xf32>
    %482 = vector.extract_strided_slice %480 {offsets = [0, 0], sizes = [8, 16], strides = [1, 1]} : vector<8x48xf32> to vector<8x16xf32>
    %483 = vector.extract_strided_slice %481 {offsets = [0, 0], sizes = [8, 16], strides = [1, 1]} : vector<8x48xf32> to vector<8x16xf32>
    %484 = arith.addf %482, %483 : vector<8x16xf32>
    %485 = arith.negf %484 : vector<8x16xf32>
    %486 = math.exp %485 : vector<8x16xf32>
    %cst_149 = arith.constant 1.000000e+00 : f32
    %487 = vector.broadcast %cst_149 : f32 to vector<8x16xf32>
    %488 = arith.addf %487, %486 : vector<8x16xf32>
    %489 = arith.divf %487, %488 : vector<8x16xf32>
    %490 = vector.extract_strided_slice %480 {offsets = [0, 16], sizes = [8, 16], strides = [1, 1]} : vector<8x48xf32> to vector<8x16xf32>
    %491 = vector.extract_strided_slice %481 {offsets = [0, 16], sizes = [8, 16], strides = [1, 1]} : vector<8x48xf32> to vector<8x16xf32>
    %492 = arith.addf %490, %491 : vector<8x16xf32>
    %493 = arith.negf %492 : vector<8x16xf32>
    %494 = math.exp %493 : vector<8x16xf32>
    %cst_150 = arith.constant 1.000000e+00 : f32
    %495 = vector.broadcast %cst_150 : f32 to vector<8x16xf32>
    %496 = arith.addf %495, %494 : vector<8x16xf32>
    %497 = arith.divf %495, %496 : vector<8x16xf32>
    %498 = vector.extract_strided_slice %480 {offsets = [0, 32], sizes = [8, 16], strides = [1, 1]} : vector<8x48xf32> to vector<8x16xf32>
    %499 = vector.extract_strided_slice %481 {offsets = [0, 32], sizes = [8, 16], strides = [1, 1]} : vector<8x48xf32> to vector<8x16xf32>
    %500 = vector.broadcast %24 : vector<1x16xf32> to vector<8x16xf32>
    %501 = arith.addf %499, %500 : vector<8x16xf32>
    %502 = arith.mulf %489, %501 : vector<8x16xf32>
    %503 = arith.addf %498, %502 : vector<8x16xf32>
    %504 = math.tanh %503 : vector<8x16xf32>
    %cst_151 = arith.constant 1.000000e+00 : f32
    %505 = vector.broadcast %cst_151 : f32 to vector<8x16xf32>
    %506 = arith.subf %505, %497 : vector<8x16xf32>
    %507 = arith.mulf %506, %504 : vector<8x16xf32>
    %508 = arith.mulf %497, %434 : vector<8x16xf32>
    %509 = arith.addf %507, %508 : vector<8x16xf32>
    %510 = arith.index_cast %477 : i32 to index
    %c0_152 = arith.constant 0 : index
    %c0_153 = arith.constant 0 : index
    %511 = vector.load %arg12[%510, %c0_152, %c0_153] : memref<8x8x48xf32, #tpu.memory_space<vmem>>, vector<1x8x48xf32>
    %512 = vector.shape_cast %511 : vector<1x8x48xf32> to vector<8x48xf32>
    %cst_154 = arith.constant dense<0.000000e+00> : vector<8x48xf32>
    %513 = tpu.matmul %466, %23, %cst_154 {dimension_numbers = #tpu.dot_dimension_numbers<[1], [0], [0], [1], [0, 0, 1, 1], [], []>} : vector<8x16xf32>, vector<16x48xf32>, vector<8x48xf32> -> vector<8x48xf32>
    %514 = vector.extract_strided_slice %512 {offsets = [0, 0], sizes = [8, 16], strides = [1, 1]} : vector<8x48xf32> to vector<8x16xf32>
    %515 = vector.extract_strided_slice %513 {offsets = [0, 0], sizes = [8, 16], strides = [1, 1]} : vector<8x48xf32> to vector<8x16xf32>
    %516 = arith.addf %514, %515 : vector<8x16xf32>
    %517 = arith.negf %516 : vector<8x16xf32>
    %518 = math.exp %517 : vector<8x16xf32>
    %cst_155 = arith.constant 1.000000e+00 : f32
    %519 = vector.broadcast %cst_155 : f32 to vector<8x16xf32>
    %520 = arith.addf %519, %518 : vector<8x16xf32>
    %521 = arith.divf %519, %520 : vector<8x16xf32>
    %522 = vector.extract_strided_slice %512 {offsets = [0, 16], sizes = [8, 16], strides = [1, 1]} : vector<8x48xf32> to vector<8x16xf32>
    %523 = vector.extract_strided_slice %513 {offsets = [0, 16], sizes = [8, 16], strides = [1, 1]} : vector<8x48xf32> to vector<8x16xf32>
    %524 = arith.addf %522, %523 : vector<8x16xf32>
    %525 = arith.negf %524 : vector<8x16xf32>
    %526 = math.exp %525 : vector<8x16xf32>
    %cst_156 = arith.constant 1.000000e+00 : f32
    %527 = vector.broadcast %cst_156 : f32 to vector<8x16xf32>
    %528 = arith.addf %527, %526 : vector<8x16xf32>
    %529 = arith.divf %527, %528 : vector<8x16xf32>
    %530 = vector.extract_strided_slice %512 {offsets = [0, 32], sizes = [8, 16], strides = [1, 1]} : vector<8x48xf32> to vector<8x16xf32>
    %531 = vector.extract_strided_slice %513 {offsets = [0, 32], sizes = [8, 16], strides = [1, 1]} : vector<8x48xf32> to vector<8x16xf32>
    %532 = vector.broadcast %25 : vector<1x16xf32> to vector<8x16xf32>
    %533 = arith.addf %531, %532 : vector<8x16xf32>
    %534 = arith.mulf %521, %533 : vector<8x16xf32>
    %535 = arith.addf %530, %534 : vector<8x16xf32>
    %536 = math.tanh %535 : vector<8x16xf32>
    %cst_157 = arith.constant 1.000000e+00 : f32
    %537 = vector.broadcast %cst_157 : f32 to vector<8x16xf32>
    %538 = arith.subf %537, %529 : vector<8x16xf32>
    %539 = arith.mulf %538, %536 : vector<8x16xf32>
    %540 = arith.mulf %529, %466 : vector<8x16xf32>
    %541 = arith.addf %539, %540 : vector<8x16xf32>
    %542 = arith.truncf %509 : vector<8x16xf32> to vector<8x16xbf16>
    %c0_158 = arith.constant 0 : index
    %543 = arith.index_cast %c6_i32 : i32 to index
    %c0_159 = arith.constant 0 : index
    %c0_160 = arith.constant 0 : index
    %544 = vector.load %arg10[%c0_158, %543, %c0_159, %c0_160] : memref<2x8x8x16xbf16, #tpu.memory_space<vmem>>, vector<1x1x8x16xbf16>
    %545 = vector.shape_cast %544 : vector<1x1x8x16xbf16> to vector<8x16xbf16>
    %546 = vector.shape_cast %542 : vector<8x16xbf16> to vector<1x1x8x16xbf16>
    tpu.vector_store %arg10[%c0_158, %543, %c0_159, %c0_160], %546 {strides = array<i32>} : memref<2x8x8x16xbf16, #tpu.memory_space<vmem>>, vector<1x1x8x16xbf16>,
    %547 = arith.truncf %541 : vector<8x16xf32> to vector<8x16xbf16>
    %c1_161 = arith.constant 1 : index
    %548 = arith.index_cast %477 : i32 to index
    %c0_162 = arith.constant 0 : index
    %c0_163 = arith.constant 0 : index
    %549 = vector.load %arg10[%c1_161, %548, %c0_162, %c0_163] : memref<2x8x8x16xbf16, #tpu.memory_space<vmem>>, vector<1x1x8x16xbf16>
    %550 = vector.shape_cast %549 : vector<1x1x8x16xbf16> to vector<8x16xbf16>
    %551 = vector.shape_cast %547 : vector<8x16xbf16> to vector<1x1x8x16xbf16>
    tpu.vector_store %arg10[%c1_161, %548, %c0_162, %c0_163], %551 {strides = array<i32>} : memref<2x8x8x16xbf16, #tpu.memory_space<vmem>>, vector<1x1x8x16xbf16>,
    %c7_i32_164 = arith.constant 7 : i32
    %c7_i32_165 = arith.constant 7 : i32
    %552 = arith.subi %c7_i32_165, %c7_i32_164 : i32
    %553 = arith.index_cast %c7_i32_164 : i32 to index
    %c0_166 = arith.constant 0 : index
    %c0_167 = arith.constant 0 : index
    %554 = vector.load %arg11[%553, %c0_166, %c0_167] : memref<8x8x48xf32, #tpu.memory_space<vmem>>, vector<1x8x48xf32>
    %555 = vector.shape_cast %554 : vector<1x8x48xf32> to vector<8x48xf32>
    %cst_168 = arith.constant dense<0.000000e+00> : vector<8x48xf32>
    %556 = tpu.matmul %509, %22, %cst_168 {dimension_numbers = #tpu.dot_dimension_numbers<[1], [0], [0], [1], [0, 0, 1, 1], [], []>} : vector<8x16xf32>, vector<16x48xf32>, vector<8x48xf32> -> vector<8x48xf32>
    %557 = vector.extract_strided_slice %555 {offsets = [0, 0], sizes = [8, 16], strides = [1, 1]} : vector<8x48xf32> to vector<8x16xf32>
    %558 = vector.extract_strided_slice %556 {offsets = [0, 0], sizes = [8, 16], strides = [1, 1]} : vector<8x48xf32> to vector<8x16xf32>
    %559 = arith.addf %557, %558 : vector<8x16xf32>
    %560 = arith.negf %559 : vector<8x16xf32>
    %561 = math.exp %560 : vector<8x16xf32>
    %cst_169 = arith.constant 1.000000e+00 : f32
    %562 = vector.broadcast %cst_169 : f32 to vector<8x16xf32>
    %563 = arith.addf %562, %561 : vector<8x16xf32>
    %564 = arith.divf %562, %563 : vector<8x16xf32>
    %565 = vector.extract_strided_slice %555 {offsets = [0, 16], sizes = [8, 16], strides = [1, 1]} : vector<8x48xf32> to vector<8x16xf32>
    %566 = vector.extract_strided_slice %556 {offsets = [0, 16], sizes = [8, 16], strides = [1, 1]} : vector<8x48xf32> to vector<8x16xf32>
    %567 = arith.addf %565, %566 : vector<8x16xf32>
    %568 = arith.negf %567 : vector<8x16xf32>
    %569 = math.exp %568 : vector<8x16xf32>
    %cst_170 = arith.constant 1.000000e+00 : f32
    %570 = vector.broadcast %cst_170 : f32 to vector<8x16xf32>
    %571 = arith.addf %570, %569 : vector<8x16xf32>
    %572 = arith.divf %570, %571 : vector<8x16xf32>
    %573 = vector.extract_strided_slice %555 {offsets = [0, 32], sizes = [8, 16], strides = [1, 1]} : vector<8x48xf32> to vector<8x16xf32>
    %574 = vector.extract_strided_slice %556 {offsets = [0, 32], sizes = [8, 16], strides = [1, 1]} : vector<8x48xf32> to vector<8x16xf32>
    %575 = vector.broadcast %24 : vector<1x16xf32> to vector<8x16xf32>
    %576 = arith.addf %574, %575 : vector<8x16xf32>
    %577 = arith.mulf %564, %576 : vector<8x16xf32>
    %578 = arith.addf %573, %577 : vector<8x16xf32>
    %579 = math.tanh %578 : vector<8x16xf32>
    %cst_171 = arith.constant 1.000000e+00 : f32
    %580 = vector.broadcast %cst_171 : f32 to vector<8x16xf32>
    %581 = arith.subf %580, %572 : vector<8x16xf32>
    %582 = arith.mulf %581, %579 : vector<8x16xf32>
    %583 = arith.mulf %572, %509 : vector<8x16xf32>
    %584 = arith.addf %582, %583 : vector<8x16xf32>
    %585 = arith.index_cast %552 : i32 to index
    %c0_172 = arith.constant 0 : index
    %c0_173 = arith.constant 0 : index
    %586 = vector.load %arg12[%585, %c0_172, %c0_173] : memref<8x8x48xf32, #tpu.memory_space<vmem>>, vector<1x8x48xf32>
    %587 = vector.shape_cast %586 : vector<1x8x48xf32> to vector<8x48xf32>
    %cst_174 = arith.constant dense<0.000000e+00> : vector<8x48xf32>
    %588 = tpu.matmul %541, %23, %cst_174 {dimension_numbers = #tpu.dot_dimension_numbers<[1], [0], [0], [1], [0, 0, 1, 1], [], []>} : vector<8x16xf32>, vector<16x48xf32>, vector<8x48xf32> -> vector<8x48xf32>
    %589 = vector.extract_strided_slice %587 {offsets = [0, 0], sizes = [8, 16], strides = [1, 1]} : vector<8x48xf32> to vector<8x16xf32>
    %590 = vector.extract_strided_slice %588 {offsets = [0, 0], sizes = [8, 16], strides = [1, 1]} : vector<8x48xf32> to vector<8x16xf32>
    %591 = arith.addf %589, %590 : vector<8x16xf32>
    %592 = arith.negf %591 : vector<8x16xf32>
    %593 = math.exp %592 : vector<8x16xf32>
    %cst_175 = arith.constant 1.000000e+00 : f32
    %594 = vector.broadcast %cst_175 : f32 to vector<8x16xf32>
    %595 = arith.addf %594, %593 : vector<8x16xf32>
    %596 = arith.divf %594, %595 : vector<8x16xf32>
    %597 = vector.extract_strided_slice %587 {offsets = [0, 16], sizes = [8, 16], strides = [1, 1]} : vector<8x48xf32> to vector<8x16xf32>
    %598 = vector.extract_strided_slice %588 {offsets = [0, 16], sizes = [8, 16], strides = [1, 1]} : vector<8x48xf32> to vector<8x16xf32>
    %599 = arith.addf %597, %598 : vector<8x16xf32>
    %600 = arith.negf %599 : vector<8x16xf32>
    %601 = math.exp %600 : vector<8x16xf32>
    %cst_176 = arith.constant 1.000000e+00 : f32
    %602 = vector.broadcast %cst_176 : f32 to vector<8x16xf32>
    %603 = arith.addf %602, %601 : vector<8x16xf32>
    %604 = arith.divf %602, %603 : vector<8x16xf32>
    %605 = vector.extract_strided_slice %587 {offsets = [0, 32], sizes = [8, 16], strides = [1, 1]} : vector<8x48xf32> to vector<8x16xf32>
    %606 = vector.extract_strided_slice %588 {offsets = [0, 32], sizes = [8, 16], strides = [1, 1]} : vector<8x48xf32> to vector<8x16xf32>
    %607 = vector.broadcast %25 : vector<1x16xf32> to vector<8x16xf32>
    %608 = arith.addf %606, %607 : vector<8x16xf32>
    %609 = arith.mulf %596, %608 : vector<8x16xf32>
    %610 = arith.addf %605, %609 : vector<8x16xf32>
    %611 = math.tanh %610 : vector<8x16xf32>
    %cst_177 = arith.constant 1.000000e+00 : f32
    %612 = vector.broadcast %cst_177 : f32 to vector<8x16xf32>
    %613 = arith.subf %612, %604 : vector<8x16xf32>
    %614 = arith.mulf %613, %611 : vector<8x16xf32>
    %615 = arith.mulf %604, %541 : vector<8x16xf32>
    %616 = arith.addf %614, %615 : vector<8x16xf32>
    %617 = arith.truncf %584 : vector<8x16xf32> to vector<8x16xbf16>
    %c0_178 = arith.constant 0 : index
    %618 = arith.index_cast %c7_i32_164 : i32 to index
    %c0_179 = arith.constant 0 : index
    %c0_180 = arith.constant 0 : index
    %619 = vector.load %arg10[%c0_178, %618, %c0_179, %c0_180] : memref<2x8x8x16xbf16, #tpu.memory_space<vmem>>, vector<1x1x8x16xbf16>
    %620 = vector.shape_cast %619 : vector<1x1x8x16xbf16> to vector<8x16xbf16>
    %621 = vector.shape_cast %617 : vector<8x16xbf16> to vector<1x1x8x16xbf16>
    tpu.vector_store %arg10[%c0_178, %618, %c0_179, %c0_180], %621 {strides = array<i32>} : memref<2x8x8x16xbf16, #tpu.memory_space<vmem>>, vector<1x1x8x16xbf16>,
    %622 = arith.truncf %616 : vector<8x16xf32> to vector<8x16xbf16>
    %c1_181 = arith.constant 1 : index
    %623 = arith.index_cast %552 : i32 to index
    %c0_182 = arith.constant 0 : index
    %c0_183 = arith.constant 0 : index
    %624 = vector.load %arg10[%c1_181, %623, %c0_182, %c0_183] : memref<2x8x8x16xbf16, #tpu.memory_space<vmem>>, vector<1x1x8x16xbf16>
    %625 = vector.shape_cast %624 : vector<1x1x8x16xbf16> to vector<8x16xbf16>
    %626 = vector.shape_cast %622 : vector<8x16xbf16> to vector<1x1x8x16xbf16>
    tpu.vector_store %arg10[%c1_181, %623, %c0_182, %c0_183], %626 {strides = array<i32>} : memref<2x8x8x16xbf16, #tpu.memory_space<vmem>>, vector<1x1x8x16xbf16>,
    %c8_i32 = arith.constant 8 : i32
    return
  }
  func.func @transform_0(%arg0: i32) -> (i32, i32, i32, i32) {
    %c0_i32 = arith.constant 0 : i32
    %c0_i32_0 = arith.constant 0 : i32
    %c0_i32_1 = arith.constant 0 : i32
    %c0_i32_2 = arith.constant 0 : i32
    return %c0_i32, %c0_i32_0, %arg0, %c0_i32_1 : i32, i32, i32, i32
  }
  func.func @transform_1(%arg0: i32) -> (i32, i32, i32) {
    %c0_i32 = arith.constant 0 : i32
    %c0_i32_0 = arith.constant 0 : i32
    %c0_i32_1 = arith.constant 0 : i32
    %c0_i32_2 = arith.constant 0 : i32
    return %c0_i32, %c0_i32_0, %c0_i32_1 : i32, i32, i32
  }
  func.func @transform_2(%arg0: i32) -> (i32, i32, i32) {
    %c0_i32 = arith.constant 0 : i32
    %c0_i32_0 = arith.constant 0 : i32
    %c0_i32_1 = arith.constant 0 : i32
    %c0_i32_2 = arith.constant 0 : i32
    return %c0_i32, %c0_i32_0, %c0_i32_1 : i32, i32, i32
  }
  func.func @transform_3(%arg0: i32) -> (i32, i32) {
    %c0_i32 = arith.constant 0 : i32
    %c0_i32_0 = arith.constant 0 : i32
    %c0_i32_1 = arith.constant 0 : i32
    return %c0_i32, %c0_i32_0 : i32, i32
  }
  func.func @transform_4(%arg0: i32) -> (i32, i32) {
    %c0_i32 = arith.constant 0 : i32
    %c0_i32_0 = arith.constant 0 : i32
    %c0_i32_1 = arith.constant 0 : i32
    return %c0_i32, %c0_i32_0 : i32, i32
  }
  func.func @transform_5(%arg0: i32) -> (i32, i32) {
    %c0_i32 = arith.constant 0 : i32
    %c0_i32_0 = arith.constant 0 : i32
    %c0_i32_1 = arith.constant 0 : i32
    return %c0_i32, %c0_i32_0 : i32, i32
  }
  func.func @transform_6(%arg0: i32) -> (i32, i32) {
    %c0_i32 = arith.constant 0 : i32
    %c0_i32_0 = arith.constant 0 : i32
    %c0_i32_1 = arith.constant 0 : i32
    return %c0_i32, %c0_i32_0 : i32, i32
  }
  func.func @transform_7(%arg0: i32) -> (i32, i32) {
    %c0_i32 = arith.constant 0 : i32
    %c0_i32_0 = arith.constant 0 : i32
    %c0_i32_1 = arith.constant 0 : i32
    return %c0_i32, %c0_i32_0 : i32, i32
  }
  func.func @transform_8(%arg0: i32) -> (i32, i32) {
    %c0_i32 = arith.constant 0 : i32
    %c0_i32_0 = arith.constant 0 : i32
    %c0_i32_1 = arith.constant 0 : i32
    return %c0_i32, %c0_i32_0 : i32, i32
  }
  func.func @transform_9(%arg0: i32) -> (i32, i32, i32, i32) {
    %c0_i32 = arith.constant 0 : i32
    %c0_i32_0 = arith.constant 0 : i32
    %c0_i32_1 = arith.constant 0 : i32
    %c0_i32_2 = arith.constant 0 : i32
    return %c0_i32, %c0_i32_0, %arg0, %c0_i32_1 : i32, i32, i32, i32
  }
}

</mosaic_0001>

<bundles_post_ra>
// kernel: tpu_custom_call.1
= control target key start
LH: loop header
LB: loop body
LE: loop exit
PB: predicated region body
PF: predicated region fallthrough
CT: control target
= control target key end

     0   :  { %14 = vsyncpa [#allocation5], 0  ;;  %s3274_s0 = inlined_call_operand.hbm [shape: bf16[1,8,8,16], index: 0, kind: input, shape index: {}]   ;;  %s3275_s1 = inlined_call_operand.hbm [shape: bf16[1,16,48], index: 1, kind: input, shape index: {}]   ;;  %s3276_s2 = inlined_call_operand.hbm [shape: bf16[1,16,48], index: 2, kind: input, shape index: {}]   ;;  %s3277_s3 = inlined_call_operand.hbm [shape: f32[16,48], index: 3, kind: input, shape index: {}]   ;;  %s3278_s4 = inlined_call_operand.hbm [shape: f32[16,48], index: 4, kind: input, shape index: {}]   ;;  %s3279_s5 = inlined_call_operand.vmem [shape: f32[1,48], index: 5, kind: input, shape index: {}]   ;;  %s3280_s6 = inlined_call_operand.vmem [shape: f32[1,48], index: 6, kind: input, shape index: {}]   ;;  %s3281_s7 = inlined_call_operand.vmem [shape: f32[1,16], index: 7, kind: input, shape index: {}]   ;;  %s3282_s8 = inlined_call_operand.vmem [shape: f32[1,16], index: 8, kind: input, shape index: {}]   ;;  %s3283_s9 = inlined_call_operand.hbm [shape: bf16[2,8,8,16], index: 9, kind: output, shape index: {}]  }
   0x1   :  { %15 = vsyncpa [#allocation8], 0 }
   0x2   :  { %16 = vsyncpa [#allocation11], 0 }
   0x3   :  { %17 = vsyncpa [#allocation6], 0  ;;  %s2784_s30 = smov [#allocation7]   ;;  %s2785_s11 = smov [#allocation10]  }
   0x4   :  { %s35_s10 = sshll.u32 %s2784_s30, 4  ;;  %s59_s12 = sshll.u32 %s2785_s11, 4  ;;  %s36_s10 = int_to_ptr.vmem [resolvable:$true] %s35_s10  ;;  %s2850_s12 = int_to_ptr.vmem [resolvable:$true] %s59_s12 }
   0x5   :  { %s2644_s15 = scalar_lea.hbm %s3275_s1, 128 }
   0x6   :  { %p2645_p0 = scmp.ne.s32.totalorder %s3275_s1, %s2644_s15  ;;  %p2648_p1 = scmp.lt.u32.totalorder %s2644_s15, %s3275_s1 }
   0x8   :  { %p2650_p2 = pnand %p2648_p1, %p2645_p0 }
   0xa   :  { %2653 = shalt.err (!%p2650_p2)
}
   0xb   :  { %s2654_s20 = scalar_lea.vmem %s36_s10, 128  ;;  %p2659_p4 = scmp.lt.s32.totalorder %s36_s10, %s36_s10 }
   0xc   :  { %p2655_p3 = scmp.ne.s32.totalorder %s36_s10, %s2654_s20  ;;  %p2660_p5 = scmp.lt.s32.totalorder %s2654_s20, %s2654_s20 }
   0xe   :  { %p2661_p6 = por %p2660_p5, %p2659_p4 }
  0x10   :  { %p2662_p7 = pnand %p2661_p6, %p2655_p3 }
  0x12   :  { %2665 = shalt.err (!%p2662_p7)
}
  0x13   :  { %s2786_s21 = smov 64   ;;  %s2787_s22 = smov 4  }
  0x14   :  { %41 = dma.hbm_to_vmem [thread:$0]  %s3275_s1, 128, %s36_s10, [#allocation8], %s2786_s21, %s2786_s21, %s2787_s22  }
  0x15   :  { %s2666_s27 = scalar_lea.hbm %s3277_s3, 256 }
  0x16   :  { %p2667_p8 = scmp.ne.s32.totalorder %s3277_s3, %s2666_s27  ;;  %p2670_p9 = scmp.lt.u32.totalorder %s2666_s27, %s3277_s3 }
  0x18   :  { %p2672_p10 = pnand %p2670_p9, %p2667_p8 }
  0x1a   :  { %2675 = shalt.err (!%p2672_p10)
}
  0x1b   :  { %s2676_s13 = scalar_lea.vmem %s2850_s12, 256  ;;  %p2681_p12 = scmp.lt.s32.totalorder %s2850_s12, %s2850_s12 }
  0x1c   :  { %p2677_p11 = scmp.ne.s32.totalorder %s2850_s12, %s2676_s13  ;;  %p2682_p13 = scmp.lt.s32.totalorder %s2676_s13, %s2676_s13 }
  0x1e   :  { %p2683_p0 = por %p2682_p13, %p2681_p12 }
  0x20   :  { %p2684_p1 = pnand %p2683_p0, %p2677_p11 }
  0x22   :  { %2687 = shalt.err (!%p2684_p1)
}
  0x23   :  { %s2788_s1 = smov 128   ;;  %s2789_s10 = smov 8  }
  0x24   :  { %65 = dma.hbm_to_vmem [thread:$0]  %s3277_s3, 256, %s2850_s12, [#allocation11], %s2788_s1, %s2788_s1, %s2789_s10  }
  0x25   :  { %s2790_s16 = smov [#allocation4]   ;;  %s2791_s18 = smov [#allocation9]  }
  0x26   :  { %s23_s17 = sshll.u32 %s2790_s16, 4  ;;  %s47_s19 = sshll.u32 %s2791_s18, 4  ;;  %s24_s17 = int_to_ptr.vmem [resolvable:$true] %s23_s17  ;;  %s2887_s19 = int_to_ptr.vmem [resolvable:$true] %s47_s19 }
  0x27   :  { %s2688_s24 = scalar_lea.hbm %s3274_s0, 512 }
  0x28   :  { %p2689_p2 = scmp.ne.s32.totalorder %s3274_s0, %s2688_s24  ;;  %p2692_p3 = scmp.lt.u32.totalorder %s2688_s24, %s3274_s0 }
  0x2a   :  { %p2694_p4 = pnand %p2692_p3, %p2689_p2 }
  0x2c   :  { %2697 = shalt.err (!%p2694_p4)
}
  0x2d   :  { %s2698_s3 = scalar_lea.vmem %s24_s17, 512  ;;  %p2703_p6 = scmp.lt.s32.totalorder %s24_s17, %s24_s17 }
  0x2e   :  { %p2699_p5 = scmp.ne.s32.totalorder %s24_s17, %s2698_s3  ;;  %p2704_p7 = scmp.lt.s32.totalorder %s2698_s3, %s2698_s3 }
  0x30   :  { %p2705_p8 = por %p2704_p7, %p2703_p6 }
  0x32   :  { %p2706_p9 = pnand %p2705_p8, %p2699_p5 }
  0x34   :  { %2709 = shalt.err (!%p2706_p9)
}
  0x35   :  { %29 = dma.hbm_to_vmem [thread:$0]  %s3274_s0, 512, %s24_s17, [#allocation5], %s2786_s21, %s2786_s21, %s2787_s22  }
  0x36   :  { %s2710_s13 = scalar_lea.hbm %s3276_s2, 128 }
  0x37   :  { %p2711_p10 = scmp.ne.s32.totalorder %s3276_s2, %s2710_s13  ;;  %p2714_p11 = scmp.lt.u32.totalorder %s2710_s13, %s3276_s2 }
  0x39   :  { %p2716_p12 = pnand %p2714_p11, %p2711_p10 }
  0x3b   :  { %2719 = shalt.err (!%p2716_p12)
}
  0x3c   :  { %s2720_s20 = scalar_lea.vmem %s2887_s19, 128  ;;  %p2725_p0 = scmp.lt.s32.totalorder %s2887_s19, %s2887_s19 }
  0x3d   :  { %p2721_p13 = scmp.ne.s32.totalorder %s2887_s19, %s2720_s20  ;;  %p2726_p1 = scmp.lt.s32.totalorder %s2720_s20, %s2720_s20 }
  0x3f   :  { %p2727_p2 = por %p2726_p1, %p2725_p0 }
  0x41   :  { %p2728_p3 = pnand %p2727_p2, %p2721_p13 }
  0x43   :  { %2731 = shalt.err (!%p2728_p3)
}
  0x44   :  { %53 = dma.hbm_to_vmem [thread:$0]  %s3276_s2, 128, %s2887_s19, [#allocation8], %s2786_s21, %s2786_s21, %s2787_s22  }
  0x45   :  { %s2792_s23 = smov [#allocation12]   ;;  %s2732_s27 = scalar_lea.hbm %s3278_s4, 256 }
  0x46   :  { %s71_s24 = sshll.u32 %s2792_s23, 4  ;;  %p2733_p4 = scmp.ne.s32.totalorder %s3278_s4, %s2732_s27  ;;  %s72_s24 = int_to_ptr.vmem [resolvable:$true] %s71_s24 }
  0x47   :  { %p2736_p5 = scmp.lt.u32.totalorder %s2732_s27, %s3278_s4 }
  0x49   :  { %p2738_p6 = pnand %p2736_p5, %p2733_p4 }
  0x4b   :  { %2741 = shalt.err (!%p2738_p6)
}
  0x4c   :  { %s2742_s30 = scalar_lea.vmem %s72_s24, 256  ;;  %p2747_p8 = scmp.lt.s32.totalorder %s72_s24, %s72_s24 }
  0x4d   :  { %p2743_p7 = scmp.ne.s32.totalorder %s72_s24, %s2742_s30  ;;  %p2748_p9 = scmp.lt.s32.totalorder %s2742_s30, %s2742_s30 }
  0x4f   :  { %p2749_p10 = por %p2748_p9, %p2747_p8 }
  0x51   :  { %p2750_p11 = pnand %p2749_p10, %p2743_p7 }
  0x53   :  { %2753 = shalt.err (!%p2750_p11)
}
  0x54   :  { %77 = dma.hbm_to_vmem [thread:$0]  %s3278_s4, 256, %s72_s24, [#allocation11], %s2788_s1, %s2788_s1, %s2789_s10  }
  0x55   :  { %2776 = dma.done.wait [#allocation5], 512  }
  0x56   :  { %2777 = vsyncadd [#allocation5], 4294966784 }
  0x57   :  { %2778 = dma.done.wait [#allocation8], 256  }
  0x58   :  { %2779 = vsyncadd [#allocation8], 4294967040 }
  0x59   :  { %2780 = dma.done.wait [#allocation11], 512  }
  0x5a   :  { %2781 = vsyncadd [#allocation11], 4294966784  ;;  %v2538_v0 = vld [vmem:[#allocation7] sm:$0xff]   ;;  %v2539_v1 = vld [vmem:[#allocation9] sm:$0xff]   ;;  %vm145_vm0 = vcmask 130048   ;;  %v2793_v5 = vmov 0.0|0.0  }
  0x5b   :  { %2342 = vmatprep.subr.bf16.mxu0 %v2538_v0  ;;  %v2540_v2 = vld [vmem:[#allocation4] sm:$0xff]   ;;  %2352 = vmatprep.subr.bf16.mxu1 %v2539_v1  ;;  %v2541_v3 = vld [vmem:[#allocation4 + $0x8] sm:$0xff]   ;;  %v360_v7 = vld [vmem:[#allocation10] sm:$0xff]  ;;  %s2794_s10 = smov 32   ;;  %vm2795_vm1 = vmmov 0   ;;  %v2796_v19 = vmov 0.0  }
  0x5c   :  { %2343 = vmatpush3.bf16.msra.mxu0 %v2538_v0  ;;  %2353 = vmatpush3.bf16.msra.mxu1 %v2539_v1  ;;  %v2542_v4 = vld [vmem:[#allocation4] sm:$0xff]   ;;  %v2543_v6 = vld [vmem:[#allocation4 + $0x8] sm:$0xff]   ;;  %v361_v8 = vld [vmem:[#allocation10 + $0x8] sm:$0xff]  ;;  %vm223_vm2 = vcmask 392192   ;;  %vm589_vm3 = vcmask 125952   ;;  %s2799_s16 = smov [#allocation13]  }
  0x5d   :  { %2344 = vmatprep.mubr.msk.bf16.mxu0 %vm145_vm0, %v2540_v2  ;;  %2474 = vmatprep.subr.bf16.mxu0 %v2793_v5  ;;  %v362_v9 = vld [vmem:[#allocation12] sm:$0xff]  ;;  %v2945_v10 = vpack.c.bf16 %v361_v8, %v360_v7  ;;  %v363_v11 = vld [vmem:[#allocation12 + $0x8] sm:$0xff]  ;;  %v2544_v13 = vld [vmem:[#allocation4 + $0x10] sm:$0xff]   ;;  %s2186_s18 = sshll.u32 %s2799_s16, 4  ;;  %s2187_s18 = int_to_ptr.vmem [resolvable:$true] %s2186_s18 }
  0x5e   :  { %2477 = vmatprep.subr.bf16.mxu1 %v2793_v5  ;;  %2354 = vmatprep.mubr.msk.bf16.mxu1 %vm145_vm0, %v2542_v4  ;;  %v2947_v12 = vpack.c.bf16 %v363_v11, %v362_v9  ;;  %v2545_v14 = vld [vmem:[#allocation4 + $0x18] sm:$0xff]   ;;  %v2546_v15 = vld [vmem:[#allocation4 + $0x10] sm:$0xff]   ;;  %v2221_v17 = vld [vmem:[%s3281_s7] ss:$0 sm:$0xff]  ;;  %s2754_s20 = scalar_lea.vmem %s2187_s18, 1024  ;;  %p2759_p13 = scmp.lt.s32.totalorder %s2187_s18, %s2187_s18 }
  0x5f   :  { %2345 = vmatmul.mubr.msk.bf16.vlgmr.msra.gmra.mrb[0].mxu0 %vm145_vm0, %v2541_v3  ;;  %2355 = vmatmul.mubr.msk.bf16.vlgmr.msra.gmra.mrb[0].mxu1 %vm145_vm0, %v2543_v6  ;;  %v2547_v16 = vld [vmem:[#allocation4 + $0x18] sm:$0xff]   ;;  %v2223_v18 = vld [vmem:[%s3282_s8] ss:$0 sm:$0xff]  ;;  %p2755_p12 = scmp.ne.s32.totalorder %s2187_s18, %s2754_s20  ;;  %p2760_p0 = scmp.lt.s32.totalorder %s2754_s20, %s2754_s20 }
  0x60   :  { %2476 = vmatpush3.bf16.msra.mxu0 %v2945_v10  ;;  %2479 = vmatpush3.bf16.msra.mxu1 %v2947_v12  ;;  %v2200_v20 = vld [vmem:[%s3279_s5] ss:$0 sm:$0xff]  ;;  %s2797_s5 = smov 96  }
  0x61   :  { %2348 = vmatprep.mubr.msk.bf16.mxu0 %vm145_vm0, %v2544_v13  ;;  %2480 = vmatprep.subr.bf16.mxu0 %v2793_v5  ;;  %v2210_v21 = vld [vmem:[%s3280_s6] ss:$0 sm:$0xff]  ;;  %s2798_s6 = smov 112   ;;  %p2761_p1 = por %p2760_p0, %p2759_p13 }
  0x62   :  { %2483 = vmatprep.subr.bf16.mxu1 %v2793_v5  ;;  %2358 = vmatprep.mubr.msk.bf16.mxu1 %vm145_vm0, %v2546_v15 }
  0x63   :  { %452 = vrot.lane.b32.xlu0 %v2221_v17, %s2794_s10  ;;  %p2762_p2 = pnand %p2761_p1, %p2755_p12 }
  0x67   :  { %2349 = vmatmul.mubr.msk.bf16.gmra.mrb[4].mxu0 %vm145_vm0, %v2545_v14  ;;  %2359 = vmatmul.mubr.msk.bf16.gmra.mrb[4].mxu1 %vm145_vm0, %v2547_v16 }
  0x68   :  { %2366 = vmatprep.mubr.msk.f32.mxu0 %vm2795_vm1, %v2796_v19  ;;  %2373 = vmatprep.mubr.msk.f32.mxu1 %vm2795_vm1, %v2796_v19 }
  0x69   :  { %559 = vrot.lane.b32.xlu0 %v2223_v18, %s2794_s10 }
  0x6f   :  { %2367 = vmatmul.mubr.f32.vlgmr.msra.gmra.mrb[8].mxu0 %v2796_v19  ;;  %2374 = vmatmul.mubr.f32.vlgmr.msra.gmra.mrb[8].mxu1 %v2796_v19 }
  0x70   :  { %2482 = vmatpush3.bf16.msra.mxu0 %v2945_v10  ;;  %2380 = vmatprep.mubr.msk.f32.mxu0 %vm2795_vm1, %v2796_v19 }
  0x71   :  { %2485 = vmatpush3.bf16.msra.mxu1 %v2947_v12  ;;  %2387 = vmatprep.mubr.msk.f32.mxu1 %vm2795_vm1, %v2796_v19 }
  0x72   :  { %2486 = vmatprep.subr.bf16.mxu0 %v2793_v5  ;;  %2489 = vmatprep.subr.bf16.mxu1 %v2793_v5 }
  0xd5   :  { %v2993_v39 = vpop.permute.xlu0 %452 }
  0xdb   :  { %v3003_v56 = vpop.permute.xlu0 %559 }
 0x132   :  { %v2346_v22 = vpop.f32.mrb[0].mxu0  ;;  %v2356_v25 = vpop.f32.mrb[0].mxu1 }
 0x133   :  { %v201_v23 = vadd.f32 %v2346_v22, %v2200_v20  ;;  %v192_v24 = vpop.f32.mrb[1].mxu0  ;;  %v330_v28 = vadd.f32 %v2356_v25, %v2210_v21  ;;  %v321_v29 = vpop.f32.mrb[1].mxu1 }
 0x134   :  { %v193_v26 = vadd.f32 %v2200_v20, %v192_v24  ;;  %v2347_v27 = vpop.f32.mrb[2].mxu0  ;;  %v322_v32 = vadd.f32 %v2210_v21, %v321_v29  ;;  %v2357_v33 = vpop.f32.mrb[2].mxu1 }
 0x135   :  { %226 = vst.msk [vmem:[#allocation2 + $0x10] sm:$0xff] %vm223_vm2, %v201_v23  ;;  %v204_v30 = vadd.f32 %v2347_v27, %v2200_v20  ;;  %v195_v31 = vpop.f32.mrb[3].mxu0  ;;  %354 = vst.msk [vmem:[#allocation3 + $0x10] sm:$0xff] %vm223_vm2, %v330_v28  ;;  %v333_v35 = vadd.f32 %v2357_v33, %v2210_v21  ;;  %v324_v36 = vpop.f32.mrb[3].mxu1 }
 0x136   :  { %224 = vst.msk [vmem:[#allocation2] sm:$0xff] %vm223_vm2, %v193_v26  ;;  %v196_v34 = vadd.f32 %v2200_v20, %v195_v31  ;;  %352 = vst.msk [vmem:[#allocation3] sm:$0xff] %vm223_vm2, %v322_v32  ;;  %v325_v37 = vadd.f32 %v2210_v21, %v324_v36 }
 0x137   :  { %227 = vst.msk [vmem:[#allocation2 + $0x18] sm:$0xff] %vm223_vm2, %v204_v30  ;;  %355 = vst.msk [vmem:[#allocation3 + $0x18] sm:$0xff] %vm223_vm2, %v333_v35 }
 0x138   :  { %225 = vst.msk [vmem:[#allocation2 + $0x8] sm:$0xff] %vm223_vm2, %v196_v34  ;;  %353 = vst.msk [vmem:[#allocation3 + $0x8] sm:$0xff] %vm223_vm2, %v325_v37 }
 0x13a   :  { %v2350_v38 = vpop.f32.mrb[4].mxu0  ;;  %v2360_v42 = vpop.f32.mrb[4].mxu1 }
 0x13b   :  { %v217_v40 = vadd.f32 %v2350_v38, %v2200_v20  ;;  %v208_v41 = vpop.f32.mrb[5].mxu0  ;;  %v346_v44 = vadd.f32 %v2360_v42, %v2210_v21  ;;  %v337_v46 = vpop.f32.mrb[5].mxu1 }
 0x13c   :  { %v209_v43 = vadd.f32 %v2200_v20, %v208_v41  ;;  %v2351_v45 = vpop.f32.mrb[6].mxu0  ;;  %v338_v48 = vadd.f32 %v2210_v21, %v337_v46  ;;  %v2361_v50 = vpop.f32.mrb[6].mxu1 }
 0x13d   :  { %230 = vst.msk [vmem:[#allocation2 + $0x30] sm:$0xff] %vm223_vm2, %v217_v40  ;;  %v220_v47 = vadd.f32 %v2351_v45, %v2200_v20  ;;  %v211_v49 = vpop.f32.mrb[7].mxu0  ;;  %358 = vst.msk [vmem:[#allocation3 + $0x30] sm:$0xff] %vm223_vm2, %v346_v44  ;;  %v349_v52 = vadd.f32 %v2361_v50, %v2210_v21  ;;  %v340_v53 = vpop.f32.mrb[7].mxu1  ;;  %v366_v62 = vld [vmem:[#allocation2] sm:$0xff] }
 0x13e   :  { %228 = vst.msk [vmem:[#allocation2 + $0x20] sm:$0xff] %vm223_vm2, %v209_v43  ;;  %v212_v51 = vadd.f32 %v2200_v20, %v211_v49  ;;  %356 = vst.msk [vmem:[#allocation3 + $0x20] sm:$0xff] %vm223_vm2, %v338_v48  ;;  %v341_v54 = vadd.f32 %v2210_v21, %v340_v53 }
 0x13f   :  { %231 = vst.msk [vmem:[#allocation2 + $0x38] sm:$0xff] %vm223_vm2, %v220_v47  ;;  %359 = vst.msk [vmem:[#allocation3 + $0x38] sm:$0xff] %vm223_vm2, %v349_v52  ;;  %v601_v43 = vld [vmem:[#allocation2 + $0x8] sm:$0xff] }
 0x140   :  { %229 = vst.msk [vmem:[#allocation2 + $0x28] sm:$0xff] %vm223_vm2, %v212_v51  ;;  %357 = vst.msk [vmem:[#allocation3 + $0x28] sm:$0xff] %vm223_vm2, %v341_v54 }
 0x142   :  { %v436_v55 = vpop.f32.mrb[8].mxu0  ;;  %v543_v59 = vpop.f32.mrb[8].mxu1 }
 0x143   :  { %v2368_v57 = vpop.f32.mrb[9].mxu0  ;;  %v455_v58 = vadd.f32 %v2993_v39, %v436_v55  ;;  %v2375_v60 = vpop.f32.mrb[9].mxu1  ;;  %v562_v61 = vadd.f32 %v3003_v56, %v543_v59  ;;  %v440_v63 = vadd.f32 %v436_v55, %v366_v62 }
 0x144   :  { %v705_v45 = vld [vmem:[#allocation3 + $0x30] sm:$0xff] }
 0x145   :  { %457 = vrot.lane.b32.xlu1 %v455_v58, %s2797_s5  ;;  %v2220_v1 = vmul.f32 -1.442695, %v440_v63 }
 0x146   :  { %v476_v0 = vld [vmem:[#allocation3 + $0x38] sm:$0xff] }
 0x147   :  { %v547_v2 = vadd.f32 %v543_v59, %v476_v0  ;;  %2548 = vpow2.f32 %v2220_v1 }
 0x149   :  { %564 = vrot.lane.b32.xlu1 %v562_v61, %s2797_s5  ;;  %v2222_v3 = vmul.f32 -1.442695, %v547_v2 }
 0x14b   :  { %2550 = vpow2.f32 %v2222_v3 }
 0x151   :  { %v2549_v4 = vpop.eup %2548 }
 0x152   :  { %v444_v6 = vadd.f32 1.0, %v2549_v4 }
 0x154   :  { %2552 = vrcp.f32 %v444_v6 }
 0x155   :  { %v2551_v7 = vpop.eup %2550 }
 0x156   :  { %v551_v8 = vadd.f32 1.0, %v2551_v7 }
 0x158   :  { %2554 = vrcp.f32 %v551_v8 }
 0x15e   :  { %v2553_v9 = vpop.eup %2552 }
 0x15f   :  { %v467_v24 = vsub.f32 1.0, %v2553_v9  ;;  %v473_v26 = vmul.f32 0.0, %v2553_v9 }
 0x162   :  { %v2555_v14 = vpop.eup %2554 }
 0x163   :  { %v574_v29 = vsub.f32 1.0, %v2555_v14  ;;  %v580_v31 = vmul.f32 0.0, %v2555_v14 }
 0x1b7   :  { %v458_v11 = vpop.permute.xlu1 %457 }
 0x1b8   :  { %v460_v13 = vmul.f32 %v2553_v9, %v458_v11 }
 0x1ba   :  { %462 = vrot.lane.b32.xlu0 %v460_v13, %s2794_s10 }
 0x1bb   :  { %v565_v15 = vpop.permute.xlu1 %564 }
 0x1bc   :  { %v567_v16 = vmul.f32 %v2555_v14, %v565_v15 }
 0x1be   :  { %569 = vrot.lane.b32.xlu1 %v567_v16, %s2794_s10 }
 0x22c   :  { %v463_v17 = vpop.permute.xlu0 %462 }
 0x22d   :  { %v465_v18 = vadd.f32 %v463_v17, %v366_v62 }
 0x22f   :  { %2556 = vtanh.f32 %v465_v18 }
 0x230   :  { %v570_v20 = vpop.permute.xlu1 %569 }
 0x231   :  { %v572_v21 = vadd.f32 %v570_v20, %v476_v0 }
 0x233   :  { %2558 = vtanh.f32 %v572_v21 }
 0x239   :  { %v2557_v22 = vpop.eup %2556 }
 0x23a   :  { %469 = vrot.lane.b32.xlu0 %v2557_v22, %s2798_s6 }
 0x23d   :  { %v2559_v23 = vpop.eup %2558 }
 0x23e   :  { %576 = vrot.lane.b32.xlu1 %v2559_v23, %s2798_s6 }
 0x2ac   :  { %v470_v25 = vpop.permute.xlu0 %469 }
 0x2ad   :  { %v472_v27 = vmul.f32 %v470_v25, %v467_v24  ;;  %v827_v24 = vld [vmem:[#allocation2 + $0x10] sm:$0xff] }
 0x2af   :  { %v3013_v28 = vadd.f32 %v473_v26, %v472_v27  ;;  %v931_v26 = vld [vmem:[#allocation3 + $0x28] sm:$0xff] }
 0x2b0   :  { %v577_v30 = vpop.permute.xlu1 %576 }
 0x2b1   :  { %v579_v32 = vmul.f32 %v577_v30, %v574_v29  ;;  %603 = vrot.lane.b32.xlu0 %v3013_v28, %s2798_s6 }
 0x2b3   :  { %v3017_v33 = vadd.f32 %v580_v31, %v579_v32 }
 0x2b5   :  { %707 = vrot.lane.b32.xlu1 %v3017_v33, %s2798_s6 }
 0x323   :  { %v604_v34 = vpop.permute.xlu0 %603 }
 0x324   :  { %2381 = vmatmul.mubr.msk.f32.vlgmr.msra.gmra.mrb[10].mxu0 %vm145_vm0, %v604_v34 }
 0x325   :  { %2488 = vmatpush3.bf16.msra.mxu0 %v2945_v10  ;;  %2394 = vmatprep.mubr.msk.f32.mxu0 %vm2795_vm1, %v2796_v19 }
 0x326   :  { %2492 = vmatprep.subr.bf16.mxu0 %v2793_v5 }
 0x327   :  { %v708_v35 = vpop.permute.xlu1 %707 }
 0x328   :  { %2388 = vmatmul.mubr.msk.f32.vlgmr.msra.gmra.mrb[10].mxu1 %vm145_vm0, %v708_v35 }
 0x329   :  { %2491 = vmatpush3.bf16.msra.mxu1 %v2947_v12  ;;  %2401 = vmatprep.mubr.msk.f32.mxu1 %vm2795_vm1, %v2796_v19 }
 0x32a   :  { %2495 = vmatprep.subr.bf16.mxu1 %v2793_v5 }
 0x3f7   :  { %v673_v36 = vpop.f32.mrb[10].mxu0 }
 0x3f8   :  { %v684_v37 = vadd.f32 %v673_v36, %v2993_v39  ;;  %v2382_v38 = vpop.f32.mrb[11].mxu0  ;;  %v677_v44 = vadd.f32 %v673_v36, %v601_v43 }
 0x3fa   :  { %686 = vrot.lane.b32.xlu0 %v684_v37, %s2797_s5  ;;  %v2227_v46 = vmul.f32 -1.442695, %v677_v44 }
 0x3fb   :  { %v777_v40 = vpop.f32.mrb[10].mxu1 }
 0x3fc   :  { %v788_v41 = vadd.f32 %v777_v40, %v3003_v56  ;;  %v2389_v42 = vpop.f32.mrb[11].mxu1  ;;  %v781_v47 = vadd.f32 %v777_v40, %v705_v45  ;;  %2560 = vpow2.f32 %v2227_v46 }
 0x3fe   :  { %790 = vrot.lane.b32.xlu1 %v788_v41, %s2797_s5  ;;  %v2229_v48 = vmul.f32 -1.442695, %v781_v47 }
 0x400   :  { %2562 = vpow2.f32 %v2229_v48 }
 0x406   :  { %v2561_v49 = vpop.eup %2560 }
 0x407   :  { %v681_v50 = vadd.f32 1.0, %v2561_v49 }
 0x409   :  { %2564 = vrcp.f32 %v681_v50 }
 0x40a   :  { %v2563_v51 = vpop.eup %2562 }
 0x40b   :  { %v785_v52 = vadd.f32 1.0, %v2563_v51 }
 0x40d   :  { %2566 = vrcp.f32 %v785_v52 }
 0x413   :  { %v2565_v53 = vpop.eup %2564 }
 0x414   :  { %v696_v2 = vsub.f32 1.0, %v2565_v53  ;;  %v702_v4 = vmul.f32 %v2565_v53, %v3013_v28 }
 0x417   :  { %v2567_v57 = vpop.eup %2566 }
 0x418   :  { %v800_v8 = vsub.f32 1.0, %v2567_v57  ;;  %v806_v11 = vmul.f32 %v2567_v57, %v3017_v33 }
 0x46c   :  { %v687_v54 = vpop.permute.xlu0 %686 }
 0x46d   :  { %v689_v55 = vmul.f32 %v2565_v53, %v687_v54 }
 0x46f   :  { %691 = vrot.lane.b32.xlu0 %v689_v55, %s2794_s10 }
 0x470   :  { %v791_v58 = vpop.permute.xlu1 %790 }
 0x471   :  { %v793_v59 = vmul.f32 %v2567_v57, %v791_v58 }
 0x473   :  { %795 = vrot.lane.b32.xlu1 %v793_v59, %s2794_s10 }
 0x4e1   :  { %v692_v60 = vpop.permute.xlu0 %691 }
 0x4e2   :  { %v694_v61 = vadd.f32 %v692_v60, %v601_v43 }
 0x4e4   :  { %2568 = vtanh.f32 %v694_v61 }
 0x4e5   :  { %v796_v62 = vpop.permute.xlu1 %795 }
 0x4e6   :  { %v798_v63 = vadd.f32 %v796_v62, %v705_v45 }
 0x4e8   :  { %2570 = vtanh.f32 %v798_v63 }
 0x4ee   :  { %v2569_v0 = vpop.eup %2568 }
 0x4ef   :  { %698 = vrot.lane.b32.xlu0 %v2569_v0, %s2798_s6 }
 0x4f2   :  { %v2571_v1 = vpop.eup %2570 }
 0x4f3   :  { %802 = vrot.lane.b32.xlu1 %v2571_v1, %s2798_s6 }
 0x561   :  { %v699_v3 = vpop.permute.xlu0 %698 }
 0x562   :  { %v701_v6 = vmul.f32 %v699_v3, %v696_v2 }
 0x564   :  { %v3040_v7 = vadd.f32 %v702_v4, %v701_v6  ;;  %v1053_v4 = vld [vmem:[#allocation2 + $0x18] sm:$0xff] }
 0x565   :  { %v803_v9 = vpop.permute.xlu1 %802 }
 0x566   :  { %v805_v13 = vmul.f32 %v803_v9, %v800_v8  ;;  %829 = vrot.lane.b32.xlu0 %v3040_v7, %s2798_s6  ;;  %v1157_v8 = vld [vmem:[#allocation3 + $0x20] sm:$0xff] }
 0x568   :  { %v3045_v14 = vadd.f32 %v806_v11, %v805_v13 }
 0x56a   :  { %933 = vrot.lane.b32.xlu1 %v3045_v14, %s2798_s6 }
 0x5d8   :  { %v830_v15 = vpop.permute.xlu0 %829 }
 0x5d9   :  { %2395 = vmatmul.mubr.msk.f32.vlgmr.msra.gmra.mrb[12].mxu0 %vm145_vm0, %v830_v15 }
 0x5da   :  { %2494 = vmatpush3.bf16.msra.mxu0 %v2945_v10  ;;  %2408 = vmatprep.mubr.msk.f32.mxu0 %vm2795_vm1, %v2796_v19 }
 0x5db   :  { %2498 = vmatprep.subr.bf16.mxu0 %v2793_v5 }
 0x5dc   :  { %v934_v16 = vpop.permute.xlu1 %933 }
 0x5dd   :  { %2402 = vmatmul.mubr.msk.f32.vlgmr.msra.gmra.mrb[12].mxu1 %vm145_vm0, %v934_v16 }
 0x5de   :  { %2497 = vmatpush3.bf16.msra.mxu1 %v2947_v12  ;;  %2415 = vmatprep.mubr.msk.f32.mxu1 %vm2795_vm1, %v2796_v19 }
 0x5df   :  { %2501 = vmatprep.subr.bf16.mxu1 %v2793_v5 }
 0x6ac   :  { %v899_v17 = vpop.f32.mrb[12].mxu0 }
 0x6ad   :  { %v910_v18 = vadd.f32 %v899_v17, %v2993_v39  ;;  %v2396_v20 = vpop.f32.mrb[13].mxu0  ;;  %v903_v25 = vadd.f32 %v899_v17, %v827_v24 }
 0x6af   :  { %912 = vrot.lane.b32.xlu0 %v910_v18, %s2797_s5  ;;  %v2233_v27 = vmul.f32 -1.442695, %v903_v25 }
 0x6b0   :  { %v1003_v21 = vpop.f32.mrb[12].mxu1 }
 0x6b1   :  { %v1014_v22 = vadd.f32 %v1003_v21, %v3003_v56  ;;  %v2403_v23 = vpop.f32.mrb[13].mxu1  ;;  %v1007_v29 = vadd.f32 %v1003_v21, %v931_v26  ;;  %2572 = vpow2.f32 %v2233_v27 }
 0x6b3   :  { %1016 = vrot.lane.b32.xlu1 %v1014_v22, %s2797_s5  ;;  %v2235_v30 = vmul.f32 -1.442695, %v1007_v29 }
 0x6b5   :  { %2574 = vpow2.f32 %v2235_v30 }
 0x6bb   :  { %v2573_v31 = vpop.eup %2572 }
 0x6bc   :  { %v907_v32 = vadd.f32 1.0, %v2573_v31 }
 0x6be   :  { %2576 = vrcp.f32 %v907_v32 }
 0x6bf   :  { %v2575_v34 = vpop.eup %2574 }
 0x6c0   :  { %v1011_v35 = vadd.f32 1.0, %v2575_v34 }
 0x6c2   :  { %2578 = vrcp.f32 %v1011_v35 }
 0x6c8   :  { %v2577_v36 = vpop.eup %2576 }
 0x6c9   :  { %v922_v49 = vsub.f32 1.0, %v2577_v36  ;;  %v928_v51 = vmul.f32 %v2577_v36, %v3040_v7 }
 0x6cc   :  { %v2579_v40 = vpop.eup %2578 }
 0x6cd   :  { %v1026_v54 = vsub.f32 1.0, %v2579_v40  ;;  %v1032_v57 = vmul.f32 %v2579_v40, %v3045_v14 }
 0x721   :  { %v913_v37 = vpop.permute.xlu0 %912 }
 0x722   :  { %v915_v38 = vmul.f32 %v2577_v36, %v913_v37 }
 0x724   :  { %917 = vrot.lane.b32.xlu0 %v915_v38, %s2794_s10 }
 0x725   :  { %v1017_v41 = vpop.permute.xlu1 %1016 }
 0x726   :  { %v1019_v42 = vmul.f32 %v2579_v40, %v1017_v41 }
 0x728   :  { %1021 = vrot.lane.b32.xlu1 %v1019_v42, %s2794_s10 }
 0x796   :  { %v918_v43 = vpop.permute.xlu0 %917 }
 0x797   :  { %v920_v44 = vadd.f32 %v918_v43, %v827_v24 }
 0x799   :  { %2580 = vtanh.f32 %v920_v44 }
 0x79a   :  { %v1022_v45 = vpop.permute.xlu1 %1021 }
 0x79b   :  { %v1024_v46 = vadd.f32 %v1022_v45, %v931_v26 }
 0x79d   :  { %2582 = vtanh.f32 %v1024_v46 }
 0x7a3   :  { %v2581_v47 = vpop.eup %2580 }
 0x7a4   :  { %924 = vrot.lane.b32.xlu0 %v2581_v47, %s2798_s6 }
 0x7a7   :  { %v2583_v48 = vpop.eup %2582 }
 0x7a8   :  { %1028 = vrot.lane.b32.xlu1 %v2583_v48, %s2798_s6 }
 0x816   :  { %v925_v50 = vpop.permute.xlu0 %924 }
 0x817   :  { %v927_v52 = vmul.f32 %v925_v50, %v922_v49 }
 0x819   :  { %v3068_v53 = vadd.f32 %v928_v51, %v927_v52 }
 0x81a   :  { %v1029_v55 = vpop.permute.xlu1 %1028 }
 0x81b   :  { %v1031_v58 = vmul.f32 %v1029_v55, %v1026_v54  ;;  %1055 = vrot.lane.b32.xlu0 %v3068_v53, %s2798_s6  ;;  %v1279_v54 = vld [vmem:[#allocation2 + $0x20] sm:$0xff] }
 0x81d   :  { %v3073_v59 = vadd.f32 %v1032_v57, %v1031_v58  ;;  %v1383_v57 = vld [vmem:[#allocation3 + $0x18] sm:$0xff] }
 0x81f   :  { %1159 = vrot.lane.b32.xlu1 %v3073_v59, %s2798_s6 }
 0x88d   :  { %v1056_v60 = vpop.permute.xlu0 %1055 }
 0x88e   :  { %2409 = vmatmul.mubr.msk.f32.vlgmr.msra.gmra.mrb[14].mxu0 %vm145_vm0, %v1056_v60 }
 0x88f   :  { %2500 = vmatpush3.bf16.msra.mxu0 %v2945_v10  ;;  %2422 = vmatprep.mubr.msk.f32.mxu0 %vm2795_vm1, %v2796_v19 }
 0x890   :  { %2504 = vmatprep.subr.bf16.mxu0 %v2793_v5 }
 0x891   :  { %v1160_v61 = vpop.permute.xlu1 %1159 }
 0x892   :  { %2416 = vmatmul.mubr.msk.f32.vlgmr.msra.gmra.mrb[14].mxu1 %vm145_vm0, %v1160_v61 }
 0x893   :  { %2503 = vmatpush3.bf16.msra.mxu1 %v2947_v12  ;;  %2429 = vmatprep.mubr.msk.f32.mxu1 %vm2795_vm1, %v2796_v19 }
 0x894   :  { %2507 = vmatprep.subr.bf16.mxu1 %v2793_v5 }
 0x961   :  { %v1125_v62 = vpop.f32.mrb[14].mxu0 }
 0x962   :  { %v1136_v63 = vadd.f32 %v1125_v62, %v2993_v39  ;;  %v2410_v0 = vpop.f32.mrb[15].mxu0  ;;  %v1129_v6 = vadd.f32 %v1125_v62, %v1053_v4 }
 0x964   :  { %1138 = vrot.lane.b32.xlu0 %v1136_v63, %s2797_s5  ;;  %v2239_v9 = vmul.f32 -1.442695, %v1129_v6 }
 0x965   :  { %v1229_v1 = vpop.f32.mrb[14].mxu1 }
 0x966   :  { %v1240_v2 = vadd.f32 %v1229_v1, %v3003_v56  ;;  %v2417_v3 = vpop.f32.mrb[15].mxu1  ;;  %v1233_v11 = vadd.f32 %v1229_v1, %v1157_v8  ;;  %2584 = vpow2.f32 %v2239_v9 }
 0x968   :  { %1242 = vrot.lane.b32.xlu1 %v1240_v2, %s2797_s5  ;;  %v2241_v13 = vmul.f32 -1.442695, %v1233_v11 }
 0x96a   :  { %2586 = vpow2.f32 %v2241_v13 }
 0x970   :  { %v2585_v15 = vpop.eup %2584 }
 0x971   :  { %v1133_v16 = vadd.f32 1.0, %v2585_v15 }
 0x973   :  { %2588 = vrcp.f32 %v1133_v16 }
 0x974   :  { %v2587_v17 = vpop.eup %2586 }
 0x975   :  { %v1237_v18 = vadd.f32 1.0, %v2587_v17 }
 0x977   :  { %2590 = vrcp.f32 %v1237_v18 }
 0x97d   :  { %v2589_v20 = vpop.eup %2588 }
 0x97e   :  { %v1148_v34 = vsub.f32 1.0, %v2589_v20  ;;  %v1154_v36 = vmul.f32 %v2589_v20, %v3068_v53 }
 0x981   :  { %v2591_v23 = vpop.eup %2590 }
 0x982   :  { %v1252_v40 = vsub.f32 1.0, %v2591_v23  ;;  %v1258_v42 = vmul.f32 %v2591_v23, %v3073_v59 }
 0x9d6   :  { %v1139_v21 = vpop.permute.xlu0 %1138 }
 0x9d7   :  { %v1141_v22 = vmul.f32 %v2589_v20, %v1139_v21 }
 0x9d9   :  { %1143 = vrot.lane.b32.xlu0 %v1141_v22, %s2794_s10 }
 0x9da   :  { %v1243_v24 = vpop.permute.xlu1 %1242 }
 0x9db   :  { %v1245_v25 = vmul.f32 %v2591_v23, %v1243_v24 }
 0x9dd   :  { %1247 = vrot.lane.b32.xlu1 %v1245_v25, %s2794_s10 }
 0xa4b   :  { %v1144_v26 = vpop.permute.xlu0 %1143 }
 0xa4c   :  { %v1146_v27 = vadd.f32 %v1144_v26, %v1053_v4 }
 0xa4e   :  { %2592 = vtanh.f32 %v1146_v27 }
 0xa4f   :  { %v1248_v29 = vpop.permute.xlu1 %1247 }
 0xa50   :  { %v1250_v30 = vadd.f32 %v1248_v29, %v1157_v8 }
 0xa52   :  { %2594 = vtanh.f32 %v1250_v30 }
 0xa58   :  { %v2593_v31 = vpop.eup %2592 }
 0xa59   :  { %1150 = vrot.lane.b32.xlu0 %v2593_v31, %s2798_s6 }
 0xa5c   :  { %v2595_v32 = vpop.eup %2594 }
 0xa5d   :  { %1254 = vrot.lane.b32.xlu1 %v2595_v32, %s2798_s6 }
 0xacb   :  { %v1151_v35 = vpop.permute.xlu0 %1150 }
 0xacc   :  { %v1153_v37 = vmul.f32 %v1151_v35, %v1148_v34 }
 0xace   :  { %v3096_v38 = vadd.f32 %v1154_v36, %v1153_v37 }
 0xacf   :  { %v1255_v41 = vpop.permute.xlu1 %1254 }
 0xad0   :  { %v1257_v43 = vmul.f32 %v1255_v41, %v1252_v40  ;;  %1281 = vrot.lane.b32.xlu0 %v3096_v38, %s2798_s6 }
 0xad2   :  { %v3101_v44 = vadd.f32 %v1258_v42, %v1257_v43  ;;  %v1505_v42 = vld [vmem:[#allocation2 + $0x28] sm:$0xff] }
 0xad4   :  { %1385 = vrot.lane.b32.xlu1 %v3101_v44, %s2798_s6 }
 0xb42   :  { %v1282_v45 = vpop.permute.xlu0 %1281 }
 0xb43   :  { %2423 = vmatmul.mubr.msk.f32.vlgmr.msra.gmra.mrb[16].mxu0 %vm145_vm0, %v1282_v45  ;;  %v1609_v45 = vld [vmem:[#allocation3 + $0x10] sm:$0xff] }
 0xb44   :  { %2506 = vmatpush3.bf16.msra.mxu0 %v2945_v10  ;;  %2436 = vmatprep.mubr.msk.f32.mxu0 %vm2795_vm1, %v2796_v19 }
 0xb45   :  { %2510 = vmatprep.subr.bf16.mxu0 %v2793_v5 }
 0xb46   :  { %v1386_v46 = vpop.permute.xlu1 %1385 }
 0xb47   :  { %2430 = vmatmul.mubr.msk.f32.vlgmr.msra.gmra.mrb[16].mxu1 %vm145_vm0, %v1386_v46 }
 0xb48   :  { %2509 = vmatpush3.bf16.msra.mxu1 %v2947_v12  ;;  %2443 = vmatprep.mubr.msk.f32.mxu1 %vm2795_vm1, %v2796_v19 }
 0xb49   :  { %2513 = vmatprep.subr.bf16.mxu1 %v2793_v5 }
 0xc16   :  { %v1351_v47 = vpop.f32.mrb[16].mxu0 }
 0xc17   :  { %v1362_v48 = vadd.f32 %v1351_v47, %v2993_v39  ;;  %v2424_v49 = vpop.f32.mrb[17].mxu0  ;;  %v1355_v55 = vadd.f32 %v1351_v47, %v1279_v54 }
 0xc19   :  { %1364 = vrot.lane.b32.xlu0 %v1362_v48, %s2797_s5  ;;  %v2245_v58 = vmul.f32 -1.442695, %v1355_v55 }
 0xc1a   :  { %v1455_v50 = vpop.f32.mrb[16].mxu1 }
 0xc1b   :  { %v1466_v51 = vadd.f32 %v1455_v50, %v3003_v56  ;;  %v2431_v52 = vpop.f32.mrb[17].mxu1  ;;  %v1459_v60 = vadd.f32 %v1455_v50, %v1383_v57  ;;  %2596 = vpow2.f32 %v2245_v58 }
 0xc1d   :  { %1468 = vrot.lane.b32.xlu1 %v1466_v51, %s2797_s5  ;;  %v2247_v61 = vmul.f32 -1.442695, %v1459_v60 }
 0xc1f   :  { %2598 = vpow2.f32 %v2247_v61 }
 0xc25   :  { %v2597_v62 = vpop.eup %2596 }
 0xc26   :  { %v1359_v63 = vadd.f32 1.0, %v2597_v62 }
 0xc28   :  { %2600 = vrcp.f32 %v1359_v63 }
 0xc29   :  { %v2599_v0 = vpop.eup %2598 }
 0xc2a   :  { %v1463_v1 = vadd.f32 1.0, %v2599_v0 }
 0xc2c   :  { %2602 = vrcp.f32 %v1463_v1 }
 0xc32   :  { %v2601_v2 = vpop.eup %2600 }
 0xc33   :  { %v1374_v20 = vsub.f32 1.0, %v2601_v2  ;;  %v1380_v22 = vmul.f32 %v2601_v2, %v3096_v38 }
 0xc36   :  { %v2603_v6 = vpop.eup %2602 }
 0xc37   :  { %v1478_v25 = vsub.f32 1.0, %v2603_v6  ;;  %v1484_v27 = vmul.f32 %v2603_v6, %v3101_v44 }
 0xc8b   :  { %v1365_v3 = vpop.permute.xlu0 %1364 }
 0xc8c   :  { %v1367_v4 = vmul.f32 %v2601_v2, %v1365_v3 }
 0xc8e   :  { %1369 = vrot.lane.b32.xlu0 %v1367_v4, %s2794_s10 }
 0xc8f   :  { %v1469_v8 = vpop.permute.xlu1 %1468 }
 0xc90   :  { %v1471_v9 = vmul.f32 %v2603_v6, %v1469_v8 }
 0xc92   :  { %1473 = vrot.lane.b32.xlu1 %v1471_v9, %s2794_s10 }
 0xd00   :  { %v1370_v11 = vpop.permute.xlu0 %1369 }
 0xd01   :  { %v1372_v13 = vadd.f32 %v1370_v11, %v1279_v54 }
 0xd03   :  { %2604 = vtanh.f32 %v1372_v13 }
 0xd04   :  { %v1474_v15 = vpop.permute.xlu1 %1473 }
 0xd05   :  { %v1476_v16 = vadd.f32 %v1474_v15, %v1383_v57 }
 0xd07   :  { %2606 = vtanh.f32 %v1476_v16 }
 0xd0d   :  { %v2605_v17 = vpop.eup %2604 }
 0xd0e   :  { %1376 = vrot.lane.b32.xlu0 %v2605_v17, %s2798_s6 }
 0xd11   :  { %v2607_v18 = vpop.eup %2606 }
 0xd12   :  { %1480 = vrot.lane.b32.xlu1 %v2607_v18, %s2798_s6 }
 0xd80   :  { %v1377_v21 = vpop.permute.xlu0 %1376 }
 0xd81   :  { %v1379_v23 = vmul.f32 %v1377_v21, %v1374_v20 }
 0xd83   :  { %v3124_v24 = vadd.f32 %v1380_v22, %v1379_v23 }
 0xd84   :  { %v1481_v26 = vpop.permute.xlu1 %1480 }
 0xd85   :  { %v1483_v29 = vmul.f32 %v1481_v26, %v1478_v25  ;;  %1507 = vrot.lane.b32.xlu0 %v3124_v24, %s2798_s6 }
 0xd87   :  { %v3129_v30 = vadd.f32 %v1484_v27, %v1483_v29  ;;  %v1731_v27 = vld [vmem:[#allocation2 + $0x30] sm:$0xff] }
 0xd89   :  { %1611 = vrot.lane.b32.xlu1 %v3129_v30, %s2798_s6 }
 0xdf7   :  { %v1508_v31 = vpop.permute.xlu0 %1507 }
 0xdf8   :  { %2437 = vmatmul.mubr.msk.f32.vlgmr.msra.gmra.mrb[18].mxu0 %vm145_vm0, %v1508_v31  ;;  %v1835_v31 = vld [vmem:[#allocation3 + $0x8] sm:$0xff] }
 0xdf9   :  { %2512 = vmatpush3.bf16.msra.mxu0 %v2945_v10  ;;  %2450 = vmatprep.mubr.msk.f32.mxu0 %vm2795_vm1, %v2796_v19 }
 0xdfa   :  { %2516 = vmatprep.subr.bf16.mxu0 %v2793_v5 }
 0xdfb   :  { %v1612_v32 = vpop.permute.xlu1 %1611 }
 0xdfc   :  { %2444 = vmatmul.mubr.msk.f32.vlgmr.msra.gmra.mrb[18].mxu1 %vm145_vm0, %v1612_v32 }
 0xdfd   :  { %2515 = vmatpush3.bf16.msra.mxu1 %v2947_v12  ;;  %2457 = vmatprep.mubr.msk.f32.mxu1 %vm2795_vm1, %v2796_v19 }
 0xdfe   :  { %2519 = vmatprep.subr.bf16.mxu1 %v2793_v5 }
 0xecb   :  { %v1577_v34 = vpop.f32.mrb[18].mxu0 }
 0xecc   :  { %v1588_v35 = vadd.f32 %v1577_v34, %v2993_v39  ;;  %v2438_v36 = vpop.f32.mrb[19].mxu0  ;;  %v1581_v43 = vadd.f32 %v1577_v34, %v1505_v42 }
 0xece   :  { %1590 = vrot.lane.b32.xlu0 %v1588_v35, %s2797_s5  ;;  %v2251_v46 = vmul.f32 -1.442695, %v1581_v43 }
 0xecf   :  { %v1681_v37 = vpop.f32.mrb[18].mxu1 }
 0xed0   :  { %v1692_v40 = vadd.f32 %v1681_v37, %v3003_v56  ;;  %v2445_v41 = vpop.f32.mrb[19].mxu1  ;;  %v1685_v47 = vadd.f32 %v1681_v37, %v1609_v45  ;;  %2608 = vpow2.f32 %v2251_v46 }
 0xed2   :  { %1694 = vrot.lane.b32.xlu1 %v1692_v40, %s2797_s5  ;;  %v2253_v48 = vmul.f32 -1.442695, %v1685_v47 }
 0xed4   :  { %2610 = vpow2.f32 %v2253_v48 }
 0xeda   :  { %v2609_v5 = vpop.eup %2608 }
 0xedb   :  { %v1585_v49 = vadd.f32 1.0, %v2609_v5 }
 0xedd   :  { %2612 = vrcp.f32 %v1585_v49 }
 0xede   :  { %v2611_v50 = vpop.eup %2610 }
 0xedf   :  { %v1689_v51 = vadd.f32 1.0, %v2611_v50 }
 0xee1   :  { %2614 = vrcp.f32 %v1689_v51 }
 0xee7   :  { %v2613_v52 = vpop.eup %2612 }
 0xee8   :  { %v1600_v3 = vsub.f32 1.0, %v2613_v52  ;;  %v1606_v6 = vmul.f32 %v2613_v52, %v3124_v24 }
 0xeeb   :  { %v2615_v57 = vpop.eup %2614 }
 0xeec   :  { %v1704_v11 = vsub.f32 1.0, %v2615_v57  ;;  %v1710_v15 = vmul.f32 %v2615_v57, %v3129_v30 }
 0xf40   :  { %v1591_v54 = vpop.permute.xlu0 %1590 }
 0xf41   :  { %v1593_v55 = vmul.f32 %v2613_v52, %v1591_v54 }
 0xf43   :  { %1595 = vrot.lane.b32.xlu0 %v1593_v55, %s2794_s10 }
 0xf44   :  { %v1695_v58 = vpop.permute.xlu1 %1694 }
 0xf45   :  { %v1697_v60 = vmul.f32 %v2615_v57, %v1695_v58 }
 0xf47   :  { %1699 = vrot.lane.b32.xlu1 %v1697_v60, %s2794_s10 }
 0xfb5   :  { %v1596_v61 = vpop.permute.xlu0 %1595 }
 0xfb6   :  { %v1598_v62 = vadd.f32 %v1596_v61, %v1505_v42 }
 0xfb8   :  { %2616 = vtanh.f32 %v1598_v62 }
 0xfb9   :  { %v1700_v63 = vpop.permute.xlu1 %1699 }
 0xfba   :  { %v1702_v0 = vadd.f32 %v1700_v63, %v1609_v45 }
 0xfbc   :  { %2618 = vtanh.f32 %v1702_v0 }
 0xfc2   :  { %v2617_v1 = vpop.eup %2616 }
 0xfc3   :  { %1602 = vrot.lane.b32.xlu0 %v2617_v1, %s2798_s6 }
 0xfc6   :  { %v2619_v2 = vpop.eup %2618 }
 0xfc7   :  { %1706 = vrot.lane.b32.xlu1 %v2619_v2, %s2798_s6 }
0x1035   :  { %v1603_v4 = vpop.permute.xlu0 %1602 }
0x1036   :  { %v1605_v8 = vmul.f32 %v1603_v4, %v1600_v3 }
0x1038   :  { %v3152_v9 = vadd.f32 %v1606_v6, %v1605_v8 }
0x1039   :  { %v1707_v13 = vpop.permute.xlu1 %1706 }
0x103a   :  { %v1709_v16 = vmul.f32 %v1707_v13, %v1704_v11  ;;  %1733 = vrot.lane.b32.xlu0 %v3152_v9, %s2798_s6 }
0x103c   :  { %v3157_v17 = vadd.f32 %v1710_v15, %v1709_v16  ;;  %v1957_v15 = vld [vmem:[#allocation2 + $0x38] sm:$0xff] }
0x103e   :  { %1837 = vrot.lane.b32.xlu1 %v3157_v17, %s2798_s6 }
0x10ac   :  { %v1734_v18 = vpop.permute.xlu0 %1733 }
0x10ad   :  { %2451 = vmatmul.mubr.msk.f32.vlgmr.msra.gmra.mrb[20].mxu0 %vm145_vm0, %v1734_v18  ;;  %v2060_v18 = vld [vmem:[#allocation3] sm:$0xff] }
0x10ae   :  { %2518 = vmatpush3.bf16.msra.mxu0 %v2945_v10  ;;  %2464 = vmatprep.mubr.msk.f32.mxu0 %vm2795_vm1, %v2796_v19 }
0x10b0   :  { %v1838_v20 = vpop.permute.xlu1 %1837 }
0x10b1   :  { %2458 = vmatmul.mubr.msk.f32.vlgmr.msra.gmra.mrb[20].mxu1 %vm145_vm0, %v1838_v20 }
0x10b2   :  { %2521 = vmatpush3.bf16.msra.mxu1 %v2947_v12  ;;  %2471 = vmatprep.mubr.msk.f32.mxu1 %vm2795_vm1, %v2796_v19 }
0x1180   :  { %v1803_v21 = vpop.f32.mrb[20].mxu0 }
0x1181   :  { %v1814_v22 = vadd.f32 %v1803_v21, %v2993_v39  ;;  %v2452_v23 = vpop.f32.mrb[21].mxu0  ;;  %v1807_v29 = vadd.f32 %v1803_v21, %v1731_v27 }
0x1183   :  { %1816 = vrot.lane.b32.xlu0 %v1814_v22, %s2797_s5  ;;  %v2257_v32 = vmul.f32 -1.442695, %v1807_v29 }
0x1184   :  { %v1907_v25 = vpop.f32.mrb[20].mxu1 }
0x1185   :  { %v1918_v10 = vadd.f32 %v1907_v25, %v3003_v56  ;;  %v2459_v26 = vpop.f32.mrb[21].mxu1  ;;  %v1911_v12 = vadd.f32 %v1907_v25, %v1835_v31  ;;  %2620 = vpow2.f32 %v2257_v32 }
0x1187   :  { %1920 = vrot.lane.b32.xlu1 %v1918_v10, %s2797_s5  ;;  %v2259_v34 = vmul.f32 -1.442695, %v1911_v12 }
0x1189   :  { %2622 = vpow2.f32 %v2259_v34 }
0x118f   :  { %v2621_v19 = vpop.eup %2620 }
0x1190   :  { %v1811_v35 = vadd.f32 1.0, %v2621_v19 }
0x1192   :  { %2624 = vrcp.f32 %v1811_v35 }
0x1193   :  { %v2623_v36 = vpop.eup %2622 }
0x1194   :  { %v1915_v37 = vadd.f32 1.0, %v2623_v36 }
0x1196   :  { %2626 = vrcp.f32 %v1915_v37  ;;  %v2268_v37 = vpack.c.bf16 %v3013_v28, %v3013_v28  ;;  %v2272_v28 = vpack.c.bf16 %v3068_v53, %v3068_v53  ;;  %v2276_v53 = vpack.c.bf16 %v3124_v24, %v3124_v24 }
0x119c   :  { %v2625_v40 = vpop.eup %2624 }
0x119d   :  { %v1826_v52 = vsub.f32 1.0, %v2625_v40  ;;  %v1832_v55 = vmul.f32 %v2625_v40, %v3152_v9 }
0x11a0   :  { %v2627_v43 = vpop.eup %2626 }
0x11a1   :  { %v1930_v60 = vsub.f32 1.0, %v2627_v43  ;;  %v1936_v62 = vmul.f32 %v2627_v43, %v3157_v17 }
0x11f5   :  { %v1817_v41 = vpop.permute.xlu0 %1816 }
0x11f6   :  { %v1819_v42 = vmul.f32 %v2625_v40, %v1817_v41  ;;  %v2269_v41 = vpack.c.bf16 %v3017_v33, %v3017_v33  ;;  %v2273_v33 = vpack.c.bf16 %v3073_v59, %v3073_v59  ;;  %v2277_v59 = vpack.c.bf16 %v3129_v30, %v3129_v30 }
0x11f8   :  { %1821 = vrot.lane.b32.xlu0 %v1819_v42, %s2794_s10  ;;  %v2270_v42 = vpack.c.bf16 %v3040_v7, %v3040_v7  ;;  %v2274_v7 = vpack.c.bf16 %v3096_v38, %v3096_v38  ;;  %v2278_v38 = vpack.c.bf16 %v3152_v9, %v3152_v9 }
0x11f9   :  { %v1921_v45 = vpop.permute.xlu1 %1920 }
0x11fa   :  { %v1923_v46 = vmul.f32 %v2627_v43, %v1921_v45  ;;  %v2271_v43 = vpack.c.bf16 %v3045_v14, %v3045_v14  ;;  %v2275_v14 = vpack.c.bf16 %v3101_v44, %v3101_v44  ;;  %v2279_v44 = vpack.c.bf16 %v3157_v17, %v3157_v17 }
0x11fc   :  { %1925 = vrot.lane.b32.xlu1 %v1923_v46, %s2794_s10 }
0x126a   :  { %v1822_v47 = vpop.permute.xlu0 %1821 }
0x126b   :  { %v1824_v48 = vadd.f32 %v1822_v47, %v1731_v27 }
0x126d   :  { %2628 = vtanh.f32 %v1824_v48 }
0x126e   :  { %v1926_v5 = vpop.permute.xlu1 %1925 }
0x126f   :  { %v1928_v49 = vadd.f32 %v1926_v5, %v1835_v31 }
0x1271   :  { %2630 = vtanh.f32 %v1928_v49 }
0x1277   :  { %v2629_v50 = vpop.eup %2628 }
0x1278   :  { %1828 = vrot.lane.b32.xlu0 %v2629_v50, %s2798_s6 }
0x127b   :  { %v2631_v51 = vpop.eup %2630 }
0x127c   :  { %1932 = vrot.lane.b32.xlu1 %v2631_v51, %s2798_s6 }
0x12ea   :  { %v1829_v54 = vpop.permute.xlu0 %1828 }
0x12eb   :  { %v1831_v57 = vmul.f32 %v1829_v54, %v1826_v52 }
0x12ed   :  { %v3178_v58 = vadd.f32 %v1832_v55, %v1831_v57 }
0x12ee   :  { %v1933_v61 = vpop.permute.xlu1 %1932 }
0x12ef   :  { %v1935_v63 = vmul.f32 %v1933_v61, %v1930_v60  ;;  %1959 = vrot.lane.b32.xlu0 %v3178_v58, %s2798_s6  ;;  %v2280_v24 = vpack.c.bf16 %v3178_v58, %v3178_v58 }
0x12f1   :  { %v3183_v0 = vadd.f32 %v1936_v62, %v1935_v63 }
0x12f3   :  { %2062 = vrot.lane.b32.xlu1 %v3183_v0, %s2798_s6  ;;  %v2281_v30 = vpack.c.bf16 %v3183_v0, %v3183_v0 }
0x1361   :  { %v1960_v1 = vpop.permute.xlu0 %1959 }
0x1362   :  { %2465 = vmatmul.mubr.msk.f32.vlgmr.msra.gmra.mrb[22].mxu0 %vm145_vm0, %v1960_v1 }
0x1365   :  { %v2063_v2 = vpop.permute.xlu1 %2062 }
0x1366   :  { %2472 = vmatmul.mubr.msk.f32.vlgmr.msra.gmra.mrb[22].mxu1 %vm145_vm0, %v2063_v2 }
0x1435   :  { %v2029_v3 = vpop.f32.mrb[22].mxu0 }
0x1436   :  { %v2040_v4 = vadd.f32 %v2029_v3, %v2993_v39  ;;  %v2466_v6 = vpop.f32.mrb[23].mxu0  ;;  %v2033_v16 = vadd.f32 %v2029_v3, %v1957_v15 }
0x1438   :  { %2042 = vrot.lane.b32.xlu0 %v2040_v4, %s2797_s5  ;;  %v2263_v20 = vmul.f32 -1.442695, %v2033_v16 }
0x1439   :  { %v2132_v8 = vpop.f32.mrb[22].mxu1 }
0x143a   :  { %v2143_v11 = vadd.f32 %v2132_v8, %v3003_v56  ;;  %v2473_v13 = vpop.f32.mrb[23].mxu1  ;;  %v2136_v21 = vadd.f32 %v2132_v8, %v2060_v18  ;;  %2632 = vpow2.f32 %v2263_v20 }
0x143c   :  { %2145 = vrot.lane.b32.xlu1 %v2143_v11, %s2797_s5  ;;  %v2265_v22 = vmul.f32 -1.442695, %v2136_v21 }
0x143e   :  { %2634 = vpow2.f32 %v2265_v22 }
0x1444   :  { %v2633_v23 = vpop.eup %2632 }
0x1445   :  { %v2037_v25 = vadd.f32 1.0, %v2633_v23 }
0x1447   :  { %2636 = vrcp.f32 %v2037_v25 }
0x1448   :  { %v2635_v39 = vpop.eup %2634 }
0x1449   :  { %v2140_v10 = vadd.f32 1.0, %v2635_v39 }
0x144b   :  { %2638 = vrcp.f32 %v2140_v10 }
0x1451   :  { %v2637_v26 = vpop.eup %2636 }
0x1452   :  { %v2052_v9 = vsub.f32 1.0, %v2637_v26  ;;  %v2058_v46 = vmul.f32 %v2637_v26, %v3178_v58 }
0x1455   :  { %v2639_v29 = vpop.eup %2638 }
0x1456   :  { %v2155_v17 = vsub.f32 1.0, %v2639_v29  ;;  %v2161_v51 = vmul.f32 %v2639_v29, %v3183_v0 }
0x14aa   :  { %v2043_v27 = vpop.permute.xlu0 %2042 }
0x14ab   :  { %v2045_v56 = vmul.f32 %v2637_v26, %v2043_v27 }
0x14ad   :  { %2047 = vrot.lane.b32.xlu0 %v2045_v56, %s2794_s10 }
0x14ae   :  { %v2146_v31 = vpop.permute.xlu1 %2145 }
0x14af   :  { %v2148_v32 = vmul.f32 %v2639_v29, %v2146_v31 }
0x14b1   :  { %2150 = vrot.lane.b32.xlu1 %v2148_v32, %s2794_s10 }
0x151f   :  { %v2048_v12 = vpop.permute.xlu0 %2047 }
0x1520   :  { %v2050_v34 = vadd.f32 %v2048_v12, %v1957_v15 }
0x1522   :  { %2640 = vtanh.f32 %v2050_v34 }
0x1523   :  { %v2151_v19 = vpop.permute.xlu1 %2150 }
0x1524   :  { %v2153_v35 = vadd.f32 %v2151_v19, %v2060_v18 }
0x1526   :  { %2642 = vtanh.f32 %v2153_v35 }
0x152c   :  { %v2641_v36 = vpop.eup %2640 }
0x152d   :  { %2054 = vrot.lane.b32.xlu0 %v2641_v36, %s2798_s6 }
0x1530   :  { %v2643_v40 = vpop.eup %2642 }
0x1531   :  { %2157 = vrot.lane.b32.xlu1 %v2643_v40, %s2798_s6  ;;  %586 = vrot.lane.b32.xlu0 %v2268_v37, %s2798_s6 }
0x1535   :  { %595 = vrot.lane.b32.xlu1 %v2269_v41, %s2798_s6  ;;  %812 = vrot.lane.b32.xlu0 %v2270_v42, %s2798_s6 }
0x1539   :  { %821 = vrot.lane.b32.xlu1 %v2271_v43, %s2798_s6  ;;  %1038 = vrot.lane.b32.xlu0 %v2272_v28, %s2798_s6 }
0x153d   :  { %1047 = vrot.lane.b32.xlu1 %v2273_v33, %s2798_s6  ;;  %1264 = vrot.lane.b32.xlu0 %v2274_v7, %s2798_s6 }
0x1541   :  { %1273 = vrot.lane.b32.xlu1 %v2275_v14, %s2798_s6  ;;  %1490 = vrot.lane.b32.xlu0 %v2276_v53, %s2798_s6 }
0x1545   :  { %1499 = vrot.lane.b32.xlu1 %v2277_v59, %s2798_s6  ;;  %1716 = vrot.lane.b32.xlu0 %v2278_v38, %s2798_s6 }
0x1549   :  { %1725 = vrot.lane.b32.xlu1 %v2279_v44, %s2798_s6  ;;  %1942 = vrot.lane.b32.xlu0 %v2280_v24, %s2798_s6 }
0x154d   :  { %1951 = vrot.lane.b32.xlu1 %v2281_v30, %s2798_s6 }
0x159f   :  { %v2055_v45 = vpop.permute.xlu0 %2054 }
0x15a0   :  { %v2057_v47 = vmul.f32 %v2055_v45, %v2052_v9 }
0x15a2   :  { %v2059_v48 = vadd.f32 %v2058_v46, %v2057_v47 }
0x15a3   :  { %v2158_v5 = vpop.permute.xlu1 %2157  ;;  %v587_v49 = vpop.permute.xlu0 %586 }
0x15a4   :  { %v2282_v50 = vpack.c.bf16 %v2059_v48, %v2059_v48  ;;  %v2160_v52 = vmul.f32 %v2158_v5, %v2155_v17  ;;  %590 = vst.msk [vmem:[#allocation13] sm:$0xf] %vm589_vm3, %v587_v49 }
0x15a6   :  { %v2162_v54 = vadd.f32 %v2161_v51, %v2160_v52  ;;  %2167 = vrot.lane.b32.xlu0 %v2282_v50, %s2798_s6 }
0x15a7   :  { %v596_v55 = vpop.permute.xlu1 %595  ;;  %v813_v57 = vpop.permute.xlu0 %812 }
0x15a8   :  { %v2283_v60 = vpack.c.bf16 %v2162_v54, %v2162_v54  ;;  %599 = vst.msk [vmem:[#allocation13 + $0x3c] sm:$0xf] %vm589_vm3, %v596_v55  ;;  %816 = vst.msk [vmem:[#allocation13 + $0x4] sm:$0xf] %vm589_vm3, %v813_v57 }
0x15aa   :  { %2176 = vrot.lane.b32.xlu1 %v2283_v60, %s2798_s6 }
0x15ab   :  { %v822_v58 = vpop.permute.xlu1 %821  ;;  %v1039_v61 = vpop.permute.xlu0 %1038 }
0x15ac   :  { %825 = vst.msk [vmem:[#allocation13 + $0x38] sm:$0xf] %vm589_vm3, %v822_v58  ;;  %1042 = vst.msk [vmem:[#allocation13 + $0x8] sm:$0xf] %vm589_vm3, %v1039_v61 }
0x15af   :  { %v1048_v62 = vpop.permute.xlu1 %1047  ;;  %v1265_v63 = vpop.permute.xlu0 %1264 }
0x15b0   :  { %1051 = vst.msk [vmem:[#allocation13 + $0x34] sm:$0xf] %vm589_vm3, %v1048_v62  ;;  %1268 = vst.msk [vmem:[#allocation13 + $0xc] sm:$0xf] %vm589_vm3, %v1265_v63 }
0x15b3   :  { %v1274_v0 = vpop.permute.xlu1 %1273  ;;  %v1491_v1 = vpop.permute.xlu0 %1490 }
0x15b4   :  { %1277 = vst.msk [vmem:[#allocation13 + $0x30] sm:$0xf] %vm589_vm3, %v1274_v0  ;;  %1494 = vst.msk [vmem:[#allocation13 + $0x10] sm:$0xf] %vm589_vm3, %v1491_v1 }
0x15b7   :  { %v1500_v2 = vpop.permute.xlu1 %1499  ;;  %v1717_v3 = vpop.permute.xlu0 %1716 }
0x15b8   :  { %1503 = vst.msk [vmem:[#allocation13 + $0x2c] sm:$0xf] %vm589_vm3, %v1500_v2  ;;  %1720 = vst.msk [vmem:[#allocation13 + $0x14] sm:$0xf] %vm589_vm3, %v1717_v3 }
0x15bb   :  { %v1726_v4 = vpop.permute.xlu1 %1725  ;;  %v1943_v6 = vpop.permute.xlu0 %1942 }
0x15bc   :  { %1729 = vst.msk [vmem:[#allocation13 + $0x28] sm:$0xf] %vm589_vm3, %v1726_v4  ;;  %1946 = vst.msk [vmem:[#allocation13 + $0x18] sm:$0xf] %vm589_vm3, %v1943_v6 }
0x15bf   :  { %v1952_v8 = vpop.permute.xlu1 %1951 }
0x15c0   :  { %1955 = vst.msk [vmem:[#allocation13 + $0x24] sm:$0xf] %vm589_vm3, %v1952_v8 }
0x1618   :  { %v2168_v11 = vpop.permute.xlu0 %2167 }
0x1619   :  { %2171 = vst.msk [vmem:[#allocation13 + $0x1c] sm:$0xf] %vm589_vm3, %v2168_v11 }
0x161c   :  { %v2177_v13 = vpop.permute.xlu1 %2176 }
0x161d   :  { %2180 = vst.msk [vmem:[#allocation13 + $0x20] sm:$0xf] %vm589_vm3, %v2177_v13 }
0x161e   :  { %2765 = shalt.err (!%p2762_p2)
}
0x161f   :  { %s2766_s23 = scalar_lea.hbm %s3283_s9, 1024 }
0x1620   :  { %p2767_p3 = scmp.ne.s32.totalorder %s3283_s9, %s2766_s23  ;;  %p2770_p4 = scmp.lt.u32.totalorder %s2766_s23, %s3283_s9 }
0x1622   :  { %p2772_p5 = pnand %p2770_p4, %p2767_p3 }
0x1624   :  { %2775 = shalt.err (!%p2772_p5)
}
0x1625   :  { %2192 = dma.vmem_to_hbm [thread:$0]  %s2187_s18, 1024, %s3283_s9, [#allocation6], %s2786_s21, %s2786_s21, %s2787_s22  }
0x1626   :  { %2782 = dma.done.wait [#allocation6], 1024  }
0x1627   :  { %2783 = vsyncadd [#allocation6], 4294966272 }
0x1628   :  { %2196 = vsyncpa [#allocation5], 1 }
0x1629   :  { %2197 = vsyncpa [#allocation8], 1 }
0x162a   :  { %2198 = vsyncpa [#allocation11], 1 }
0x162b   :  { %2199 = vsyncpa [#allocation6], 1 }

</bundles_post_ra>
